<compile_context>
chip_gen: v6e
topology: v6e:2x2x1
jax: 0.10.0
libtpu: 0.0.40
codegen_flags: <defaults>
</compile_context>

<pallas_src>
import functools

import jax
import jax.numpy as jnp
from jax.experimental import pallas as pl
from jax.experimental.pallas import tpu as pltpu

_LANES = 128
_MAX_COLS = 32768            # cap on the lane-dense last dim
# 4 MiB per input block: 3 arrays x 2 pipeline buffers x 4 MiB = 24 MiB live
# VMEM, safely under the 32 MiB scoped default (and v7x's 64 MiB physical).
_MAX_BLOCK_BYTES = 4 << 20


def _add_kernel(a_ref, b_ref, o_ref):
    o_ref[...] = a_ref[...] + b_ref[...]


def _target_steps():
    """>=2 pipelined grid steps per TensorCore: 4 on v7x (2 TCs), 2 elsewhere."""
    try:
        kind = jax.devices()[0].device_kind.lower()
    except Exception:
        kind = ""
    return 4 if "v7" in kind else 2


def _choose_cols(total, target_steps):
    """Largest multiple of 128 dividing `total` (capped at _MAX_COLS), preferring
    a factorization whose row count splits evenly into `target_steps` 8-row
    aligned blocks, then one whose rows are at least a multiple of 8."""
    limit = min(_MAX_COLS, total)
    for row_mult in (8 * target_steps, 8, 1):
        best = None
        cols = _LANES
        while cols <= limit:
            if total % cols == 0 and (total // cols) % row_mult == 0:
                best = cols
            cols += _LANES
        if best is not None:
            return best
    return None


def _choose_block_rows(rows, row_bytes, target_steps):
    """Largest multiple of 8 dividing `rows` whose block fits _MAX_BLOCK_BYTES
    and still yields >= target_steps grid steps; relaxes the step target, then
    the exact-division requirement (Pallas masks a ragged edge block)."""
    if rows < 8:
        return rows          # full-extent block (allowed); single grid step
    if rows % 8 != 0:
        return 8             # ragged tail block; Pallas masks the OOB rows
    best_target = None       # largest block meeting both the cap and the step target
    best_any = None          # largest block meeting just the byte cap
    for cand in range(8, rows + 1, 8):
        if rows % cand:
            continue
        if cand * row_bytes > _MAX_BLOCK_BYTES:
            continue
        best_any = cand
        if rows // cand >= target_steps:
            best_target = cand
    if best_target is not None:
        return best_target
    if best_any is not None:
        return best_any
    return 8


def _tiled_add(a2, b2, block_rows):
    rows, cols = a2.shape
    itemsize = jnp.dtype(a2.dtype).itemsize
    total = rows * cols
    grid = (pl.cdiv(rows, block_rows),)
    return pl.pallas_call(
        _add_kernel,
        out_shape=jax.ShapeDtypeStruct((rows, cols), a2.dtype),
        grid=grid,
        in_specs=[
            pl.BlockSpec((block_rows, cols), lambda i: (i, 0)),
            pl.BlockSpec((block_rows, cols), lambda i: (i, 0)),
        ],
        out_specs=pl.BlockSpec((block_rows, cols), lambda i: (i, 0)),
        input_output_aliases={0: 0},  # write result over x12's (reshaped) buffer
        cost_estimate=pl.CostEstimate(
            flops=total,
            bytes_accessed=3 * total * itemsize,
            transcendentals=0,
        ),
        compiler_params=pltpu.CompilerParams(
            dimension_semantics=(pltpu.PARALLEL,),
        ),
    )(a2, b2)


@functools.partial(jax.jit, donate_argnums=(0,))
def pallas_add(x12, x8):
    """x13 = x12 + x8.  x12 is donated and clobbered in place; do not reuse it."""
    assert x12.shape == x8.shape and x12.dtype == x8.dtype
    orig_shape = x12.shape
    total = x12.size
    itemsize = jnp.dtype(x12.dtype).itemsize

    if total % _LANES != 0 or total == 0:
        # TODO(synk): totals not divisible by 128 have no lane-dense 2D view;
        # let XLA handle (and fuse) the add for those awkward shapes.
        return x12 + x8

    target_steps = _target_steps()
    cols = _choose_cols(total, target_steps)
    rows = total // cols
    block_rows = _choose_block_rows(rows, cols * itemsize, target_steps)

    # Contiguous reshape == bitcast: donation/aliasing forwards through it.
    out2 = _tiled_add(x12.reshape(rows, cols), x8.reshape(rows, cols), block_rows)
    return out2.reshape(orig_shape)


if __name__ == "__main__":
    # Module forward: x13 = x12 + x8 with both inputs shaped [1, 32, 112, 112].
    shape = (1, 32, 112, 112)
    key = jax.random.PRNGKey(0)
    k1, k2 = jax.random.split(key)
    x12 = jax.random.normal(k1, shape, dtype=jnp.float32)
    x8 = jax.random.normal(k2, shape, dtype=jnp.float32)

    # Reference computed BEFORE the call because x12 is donated/aliased.
    ref = x12 + x8
    jax.block_until_ready(ref)

    out = pallas_add(x12, x8)
    jax.block_until_ready(out)

    assert out.shape == shape
    assert out.dtype == ref.dtype
    assert jnp.allclose(out, ref, atol=1e-6, rtol=1e-6)

    print("KERNEL_OK")
</pallas_src>

<mosaic_0001>
module attributes {stable_mosaic.version = 11 : i64} {
  func.func @_add_kernel(%arg0: i32, %arg1: memref<8x25088xf32, #tpu.memory_space<vmem>>, %arg2: memref<8x25088xf32, #tpu.memory_space<vmem>>, %arg3: memref<8x25088xf32, #tpu.memory_space<vmem>>) attributes {dimension_semantics = [#tpu.dimension_semantics<parallel>], iteration_bounds = array<i64: 2>, scalar_prefetch = 0 : i64, scratch_operands = 0 : i64, tpu.core_type = #tpu.core_type<tc>, window_params = [{transform_indices = @transform_0, window_bounds = array<i64: 8, 25088>}, {transform_indices = @transform_1, window_bounds = array<i64: 8, 25088>}, {transform_indices = @transform_2, window_bounds = array<i64: 8, 25088>}]} {
    %c0 = arith.constant 0 : index
    %c0_0 = arith.constant 0 : index
    %0 = vector.load %arg1[%c0, %c0_0] : memref<8x25088xf32, #tpu.memory_space<vmem>>, vector<8x25088xf32>
    %c0_1 = arith.constant 0 : index
    %c0_2 = arith.constant 0 : index
    %1 = vector.load %arg2[%c0_1, %c0_2] : memref<8x25088xf32, #tpu.memory_space<vmem>>, vector<8x25088xf32>
    %2 = arith.addf %0, %1 : vector<8x25088xf32>
    %c0_3 = arith.constant 0 : index
    %c0_4 = arith.constant 0 : index
    %3 = vector.load %arg3[%c0_3, %c0_4] : memref<8x25088xf32, #tpu.memory_space<vmem>>, vector<8x25088xf32>
    tpu.vector_store %arg3[%c0_3, %c0_4], %2 {strides = array<i32>} : memref<8x25088xf32, #tpu.memory_space<vmem>>, vector<8x25088xf32>,
    return
  }
  func.func @transform_0(%arg0: i32) -> (i32, i32) {
    %c0_i32 = arith.constant 0 : i32
    %c0_i32_0 = arith.constant 0 : i32
    return %arg0, %c0_i32 : i32, i32
  }
  func.func @transform_1(%arg0: i32) -> (i32, i32) {
    %c0_i32 = arith.constant 0 : i32
    %c0_i32_0 = arith.constant 0 : i32
    return %arg0, %c0_i32 : i32, i32
  }
  func.func @transform_2(%arg0: i32) -> (i32, i32) {
    %c0_i32 = arith.constant 0 : i32
    %c0_i32_0 = arith.constant 0 : i32
    return %arg0, %c0_i32 : i32, i32
  }
}

</mosaic_0001>

<bundles_post_ra>
// kernel: pallas_add.1
= control target key start
LH: loop header
LB: loop body
LE: loop exit
PB: predicated region body
PF: predicated region fallthrough
CT: control target
= control target key end

     0   :  { %s1057_s9 = smov 0   ;;  %s2259_s0 = inlined_call_operand.vmem [shape: f32[16,25088], index: 0, kind: input, shape index: {}, may-alias: {0,2}]   ;;  %s2260_s1 = inlined_call_operand.vmem [shape: f32[16,25088], index: 1, kind: input, shape index: {}]   ;;  %s2261_s2 = inlined_call_operand.vmem [shape: f32[16,25088], index: 2, kind: output, shape index: {}, may-alias: {0,2}]  }
   0x1 LB: > { %s1015_s10 = sadd.s32 4294967295, %s1040_s9   ;;  %p1019_p0 = scmp.ge.s32.totalorder %s1040_s9, 1  ;;  %s1040_s9 = sphi %s1057_s9, %s12_s9  }
   0x2   : > { %p122_p1 = scmp.lt.s32.totalorder %s1040_s9, 3 }
   0x4   : > { %p123_p2 = pnand %p1019_p0, %p122_p1 }
   0x6   : > { %126 = sbr.rel (%p123_p2) target bundleno = 243 (0xf3), region = 28 }
   0xb   : > { %p149_p3 = scmp.lt.s32.totalorder %s1015_s10, 1 }
   0xd   : > { %s2551_s10 = smov (!%p149_p3, %s1015_s10), 1 }
   0xe   : > { %s1025_s11 = smul.u32 1568, %s2551_s10 }
  0x10   : > { %s1068_s14 = scalar_lea.vmem %s2259_s0, %s1025_s11  ;;  %s1079_s17 = scalar_lea.vmem %s2260_s1, %s1025_s11 }
  0x11   : > { %v1071_v0 = vld [vmem:[%s1068_s14] sm:$0xff]  ;;  %v1074_v1 = vld [vmem:[%s1068_s14 + $0x8] sm:$0xff]  ;;  %v1082_v2 = vld [vmem:[%s1068_s14 + $0x10] sm:$0xff]  ;;  %s1111_s20 = scalar_lea.vmem %s2261_s2, %s1025_s11 }
  0x12   : > { %v1085_v3 = vld [vmem:[%s1068_s14 + $0x18] sm:$0xff]  ;;  %v1088_v4 = vld [vmem:[%s1068_s14 + $0x20] sm:$0xff]  ;;  %v1091_v5 = vld [vmem:[%s1068_s14 + $0x28] sm:$0xff] }
  0x13   : > { %v1094_v6 = vld [vmem:[%s1068_s14 + $0x30] sm:$0xff]  ;;  %v1097_v7 = vld [vmem:[%s1068_s14 + $0x38] sm:$0xff]  ;;  %v1100_v8 = vld [vmem:[%s1068_s14 + $0x40] sm:$0xff] }
  0x14   : > { %v1103_v9 = vld [vmem:[%s1068_s14 + $0x48] sm:$0xff]  ;;  %v1106_v10 = vld [vmem:[%s1068_s14 + $0x50] sm:$0xff]  ;;  %v1114_v11 = vld [vmem:[%s1068_s14 + $0x58] sm:$0xff] }
  0x15   : > { %v1117_v12 = vld [vmem:[%s1068_s14 + $0x60] sm:$0xff]  ;;  %v1120_v13 = vld [vmem:[%s1068_s14 + $0x68] sm:$0xff]  ;;  %v1123_v14 = vld [vmem:[%s1068_s14 + $0x70] sm:$0xff] }
  0x16   : > { %v1126_v15 = vld [vmem:[%s1068_s14 + $0x78] sm:$0xff]  ;;  %v1129_v16 = vld [vmem:[%s1068_s14 + $0x80] sm:$0xff]  ;;  %v1132_v17 = vld [vmem:[%s1068_s14 + $0x88] sm:$0xff] }
  0x17   : > { %v1135_v18 = vld [vmem:[%s1068_s14 + $0x90] sm:$0xff]  ;;  %v1138_v19 = vld [vmem:[%s1068_s14 + $0x98] sm:$0xff]  ;;  %v1141_v20 = vld [vmem:[%s1068_s14 + $0xa0] sm:$0xff] }
  0x18   : > { %v1144_v21 = vld [vmem:[%s1068_s14 + $0xa8] sm:$0xff]  ;;  %v1147_v22 = vld [vmem:[%s1068_s14 + $0xb0] sm:$0xff]  ;;  %v1150_v23 = vld [vmem:[%s1068_s14 + $0xb8] sm:$0xff] }
  0x19   : > { %v1153_v24 = vld [vmem:[%s1068_s14 + $0xc0] sm:$0xff]  ;;  %v1156_v25 = vld [vmem:[%s1068_s14 + $0xc8] sm:$0xff]  ;;  %v1159_v26 = vld [vmem:[%s1068_s14 + $0xd0] sm:$0xff] }
  0x1a   : > { %v1162_v27 = vld [vmem:[%s1068_s14 + $0xd8] sm:$0xff]  ;;  %v1165_v28 = vld [vmem:[%s1068_s14 + $0xe0] sm:$0xff]  ;;  %v1168_v29 = vld [vmem:[%s1068_s14 + $0xe8] sm:$0xff] }
  0x1b   : > { %v1171_v30 = vld [vmem:[%s1068_s14 + $0xf0] sm:$0xff]  ;;  %v1174_v31 = vld [vmem:[%s1068_s14 + $0xf8] sm:$0xff]  ;;  %v1177_v32 = vld [vmem:[%s1068_s14 + $0x100] sm:$0xff] }
  0x1c   : > { %v1180_v33 = vld [vmem:[%s1068_s14 + $0x108] sm:$0xff]  ;;  %v1183_v34 = vld [vmem:[%s1068_s14 + $0x110] sm:$0xff]  ;;  %v1186_v35 = vld [vmem:[%s1068_s14 + $0x118] sm:$0xff] }
  0x1d   : > { %v1189_v36 = vld [vmem:[%s1068_s14 + $0x120] sm:$0xff]  ;;  %v1192_v37 = vld [vmem:[%s1068_s14 + $0x128] sm:$0xff]  ;;  %v1195_v38 = vld [vmem:[%s1068_s14 + $0x130] sm:$0xff] }
  0x1e   : > { %v1198_v39 = vld [vmem:[%s1068_s14 + $0x138] sm:$0xff]  ;;  %v1201_v40 = vld [vmem:[%s1068_s14 + $0x140] sm:$0xff]  ;;  %v1204_v41 = vld [vmem:[%s1068_s14 + $0x148] sm:$0xff] }
  0x1f   : > { %v1207_v42 = vld [vmem:[%s1068_s14 + $0x150] sm:$0xff]  ;;  %v1210_v43 = vld [vmem:[%s1068_s14 + $0x158] sm:$0xff]  ;;  %v1213_v44 = vld [vmem:[%s1068_s14 + $0x160] sm:$0xff] }
  0x20   : > { %v1216_v45 = vld [vmem:[%s1068_s14 + $0x168] sm:$0xff]  ;;  %v1219_v46 = vld [vmem:[%s1068_s14 + $0x170] sm:$0xff]  ;;  %v1222_v47 = vld [vmem:[%s1068_s14 + $0x178] sm:$0xff] }
  0x21   : > { %v1225_v48 = vld [vmem:[%s1068_s14 + $0x180] sm:$0xff]  ;;  %v1228_v49 = vld [vmem:[%s1068_s14 + $0x188] sm:$0xff]  ;;  %v1231_v50 = vld [vmem:[%s1068_s14 + $0x190] sm:$0xff] }
  0x22   : > { %v1234_v51 = vld [vmem:[%s1068_s14 + $0x198] sm:$0xff]  ;;  %v1237_v52 = vld [vmem:[%s1068_s14 + $0x1a0] sm:$0xff]  ;;  %v1240_v53 = vld [vmem:[%s1068_s14 + $0x1a8] sm:$0xff] }
  0x23   : > { %2262 = vst [vmem:[#allocation2_spill] sm:$0xff] %v1237_v52  ;;  %2263 = vst [vmem:[#allocation3_spill] sm:$0xff] %v1240_v53  ;;  %v1243_v54 = vld [vmem:[%s1068_s14 + $0x1b0] sm:$0xff]  ;;  %v1246_v55 = vld [vmem:[%s1068_s14 + $0x1b8] sm:$0xff] }
  0x24   : > { %2264 = vst [vmem:[#allocation4_spill] sm:$0xff] %v1243_v54  ;;  %2265 = vst [vmem:[#allocation5_spill] sm:$0xff] %v1246_v55  ;;  %v1249_v56 = vld [vmem:[%s1068_s14 + $0x1c0] sm:$0xff]  ;;  %v1252_v57 = vld [vmem:[%s1068_s14 + $0x1c8] sm:$0xff] }
  0x25   : > { %2266 = vst [vmem:[#allocation6_spill] sm:$0xff] %v1249_v56  ;;  %2267 = vst [vmem:[#allocation7_spill] sm:$0xff] %v1252_v57  ;;  %v1255_v58 = vld [vmem:[%s1068_s14 + $0x1d0] sm:$0xff]  ;;  %v1258_v59 = vld [vmem:[%s1068_s14 + $0x1d8] sm:$0xff] }
  0x26   : > { %2268 = vst [vmem:[#allocation8_spill] sm:$0xff] %v1255_v58  ;;  %2269 = vst [vmem:[#allocation9_spill] sm:$0xff] %v1258_v59  ;;  %v1261_v60 = vld [vmem:[%s1068_s14 + $0x1e0] sm:$0xff]  ;;  %v1264_v61 = vld [vmem:[%s1068_s14 + $0x1e8] sm:$0xff] }
  0x27   : > { %2270 = vst [vmem:[#allocation10_spill] sm:$0xff] %v1261_v60  ;;  %2271 = vst [vmem:[#allocation11_spill] sm:$0xff] %v1264_v61  ;;  %v1267_v62 = vld [vmem:[%s1068_s14 + $0x1f0] sm:$0xff]  ;;  %v1270_v63 = vld [vmem:[%s1068_s14 + $0x1f8] sm:$0xff] }
  0x28   : > { %2272 = vst [vmem:[#allocation12_spill] sm:$0xff] %v1267_v62  ;;  %2273 = vst [vmem:[#allocation13_spill] sm:$0xff] %v1270_v63  ;;  %v1273_v57 = vld [vmem:[%s1068_s14 + $0x200] sm:$0xff]  ;;  %v1276_v58 = vld [vmem:[%s1068_s14 + $0x208] sm:$0xff] }
  0x29   : > { %2274 = vst [vmem:[#allocation14_spill] sm:$0xff] %v1273_v57  ;;  %2275 = vst [vmem:[#allocation15_spill] sm:$0xff] %v1276_v58  ;;  %v1279_v59 = vld [vmem:[%s1068_s14 + $0x210] sm:$0xff]  ;;  %v1282_v60 = vld [vmem:[%s1068_s14 + $0x218] sm:$0xff] }
  0x2a   : > { %2276 = vst [vmem:[#allocation16_spill] sm:$0xff] %v1279_v59  ;;  %2277 = vst [vmem:[#allocation17_spill] sm:$0xff] %v1282_v60  ;;  %v1285_v61 = vld [vmem:[%s1068_s14 + $0x220] sm:$0xff]  ;;  %v1288_v62 = vld [vmem:[%s1068_s14 + $0x228] sm:$0xff] }
  0x2b   : > { %2278 = vst [vmem:[#allocation18_spill] sm:$0xff] %v1285_v61  ;;  %2279 = vst [vmem:[#allocation19_spill] sm:$0xff] %v1288_v62  ;;  %v1291_v63 = vld [vmem:[%s1068_s14 + $0x230] sm:$0xff]  ;;  %v1294_v57 = vld [vmem:[%s1068_s14 + $0x238] sm:$0xff] }
  0x2c   : > { %2280 = vst [vmem:[#allocation20_spill] sm:$0xff] %v1291_v63  ;;  %2281 = vst [vmem:[#allocation21_spill] sm:$0xff] %v1294_v57  ;;  %v1297_v58 = vld [vmem:[%s1068_s14 + $0x240] sm:$0xff]  ;;  %v1300_v59 = vld [vmem:[%s1068_s14 + $0x248] sm:$0xff] }
  0x2d   : > { %2282 = vst [vmem:[#allocation22_spill] sm:$0xff] %v1297_v58  ;;  %2283 = vst [vmem:[#allocation23_spill] sm:$0xff] %v1300_v59  ;;  %v1303_v60 = vld [vmem:[%s1068_s14 + $0x250] sm:$0xff]  ;;  %v1306_v61 = vld [vmem:[%s1068_s14 + $0x258] sm:$0xff] }
  0x2e   : > { %2284 = vst [vmem:[#allocation24_spill] sm:$0xff] %v1303_v60  ;;  %2285 = vst [vmem:[#allocation25_spill] sm:$0xff] %v1306_v61  ;;  %v1309_v62 = vld [vmem:[%s1068_s14 + $0x260] sm:$0xff]  ;;  %v1312_v63 = vld [vmem:[%s1068_s14 + $0x268] sm:$0xff] }
  0x2f   : > { %2286 = vst [vmem:[#allocation26_spill] sm:$0xff] %v1309_v62  ;;  %2287 = vst [vmem:[#allocation27_spill] sm:$0xff] %v1312_v63  ;;  %v1315_v57 = vld [vmem:[%s1068_s14 + $0x270] sm:$0xff]  ;;  %v1318_v58 = vld [vmem:[%s1068_s14 + $0x278] sm:$0xff] }
  0x30   : > { %2288 = vst [vmem:[#allocation28_spill] sm:$0xff] %v1315_v57  ;;  %2289 = vst [vmem:[#allocation29_spill] sm:$0xff] %v1318_v58  ;;  %v1321_v59 = vld [vmem:[%s1068_s14 + $0x280] sm:$0xff]  ;;  %v1324_v60 = vld [vmem:[%s1068_s14 + $0x288] sm:$0xff] }
  0x31   : > { %2290 = vst [vmem:[#allocation30_spill] sm:$0xff] %v1321_v59  ;;  %2291 = vst [vmem:[#allocation31_spill] sm:$0xff] %v1324_v60  ;;  %v1327_v61 = vld [vmem:[%s1068_s14 + $0x290] sm:$0xff]  ;;  %v1330_v62 = vld [vmem:[%s1068_s14 + $0x298] sm:$0xff] }
  0x32   : > { %2292 = vst [vmem:[#allocation32_spill] sm:$0xff] %v1327_v61  ;;  %2293 = vst [vmem:[#allocation33_spill] sm:$0xff] %v1330_v62  ;;  %v1333_v63 = vld [vmem:[%s1068_s14 + $0x2a0] sm:$0xff]  ;;  %v1336_v57 = vld [vmem:[%s1068_s14 + $0x2a8] sm:$0xff] }
  0x33   : > { %2294 = vst [vmem:[#allocation34_spill] sm:$0xff] %v1333_v63  ;;  %2295 = vst [vmem:[#allocation35_spill] sm:$0xff] %v1336_v57  ;;  %v1339_v58 = vld [vmem:[%s1068_s14 + $0x2b0] sm:$0xff]  ;;  %v1342_v59 = vld [vmem:[%s1068_s14 + $0x2b8] sm:$0xff] }
  0x34   : > { %2296 = vst [vmem:[#allocation36_spill] sm:$0xff] %v1339_v58  ;;  %2297 = vst [vmem:[#allocation37_spill] sm:$0xff] %v1342_v59  ;;  %v1345_v60 = vld [vmem:[%s1068_s14 + $0x2c0] sm:$0xff]  ;;  %v1348_v61 = vld [vmem:[%s1068_s14 + $0x2c8] sm:$0xff] }
  0x35   : > { %2298 = vst [vmem:[#allocation38_spill] sm:$0xff] %v1345_v60  ;;  %2299 = vst [vmem:[#allocation39_spill] sm:$0xff] %v1348_v61  ;;  %v1351_v62 = vld [vmem:[%s1068_s14 + $0x2d0] sm:$0xff]  ;;  %v1354_v63 = vld [vmem:[%s1068_s14 + $0x2d8] sm:$0xff] }
  0x36   : > { %2300 = vst [vmem:[#allocation40_spill] sm:$0xff] %v1351_v62  ;;  %2301 = vst [vmem:[#allocation41_spill] sm:$0xff] %v1354_v63  ;;  %v1357_v57 = vld [vmem:[%s1068_s14 + $0x2e0] sm:$0xff]  ;;  %v1360_v58 = vld [vmem:[%s1068_s14 + $0x2e8] sm:$0xff] }
  0x37   : > { %2302 = vst [vmem:[#allocation42_spill] sm:$0xff] %v1357_v57  ;;  %2303 = vst [vmem:[#allocation43_spill] sm:$0xff] %v1360_v58  ;;  %v1363_v59 = vld [vmem:[%s1068_s14 + $0x2f0] sm:$0xff]  ;;  %v1366_v60 = vld [vmem:[%s1068_s14 + $0x2f8] sm:$0xff] }
  0x38   : > { %2304 = vst [vmem:[#allocation44_spill] sm:$0xff] %v1363_v59  ;;  %2305 = vst [vmem:[#allocation45_spill] sm:$0xff] %v1366_v60  ;;  %v1369_v61 = vld [vmem:[%s1068_s14 + $0x300] sm:$0xff]  ;;  %v1372_v62 = vld [vmem:[%s1068_s14 + $0x308] sm:$0xff] }
  0x39   : > { %2306 = vst [vmem:[#allocation46_spill] sm:$0xff] %v1369_v61  ;;  %2307 = vst [vmem:[#allocation47_spill] sm:$0xff] %v1372_v62  ;;  %v1375_v63 = vld [vmem:[%s1068_s14 + $0x310] sm:$0xff]  ;;  %v1378_v57 = vld [vmem:[%s1068_s14 + $0x318] sm:$0xff] }
  0x3a   : > { %2308 = vst [vmem:[#allocation48_spill] sm:$0xff] %v1375_v63  ;;  %2309 = vst [vmem:[#allocation49_spill] sm:$0xff] %v1378_v57  ;;  %v1381_v58 = vld [vmem:[%s1068_s14 + $0x320] sm:$0xff]  ;;  %v1384_v59 = vld [vmem:[%s1068_s14 + $0x328] sm:$0xff] }
  0x3b   : > { %2310 = vst [vmem:[#allocation50_spill] sm:$0xff] %v1381_v58  ;;  %2311 = vst [vmem:[#allocation51_spill] sm:$0xff] %v1384_v59  ;;  %v1387_v60 = vld [vmem:[%s1068_s14 + $0x330] sm:$0xff]  ;;  %v1390_v61 = vld [vmem:[%s1068_s14 + $0x338] sm:$0xff] }
  0x3c   : > { %2312 = vst [vmem:[#allocation52_spill] sm:$0xff] %v1387_v60  ;;  %2313 = vst [vmem:[#allocation53_spill] sm:$0xff] %v1390_v61  ;;  %v1393_v62 = vld [vmem:[%s1068_s14 + $0x340] sm:$0xff]  ;;  %v1396_v63 = vld [vmem:[%s1068_s14 + $0x348] sm:$0xff] }
  0x3d   : > { %2314 = vst [vmem:[#allocation54_spill] sm:$0xff] %v1393_v62  ;;  %2315 = vst [vmem:[#allocation55_spill] sm:$0xff] %v1396_v63  ;;  %v1399_v57 = vld [vmem:[%s1068_s14 + $0x350] sm:$0xff]  ;;  %v1402_v58 = vld [vmem:[%s1068_s14 + $0x358] sm:$0xff] }
  0x3e   : > { %2316 = vst [vmem:[#allocation56_spill] sm:$0xff] %v1399_v57  ;;  %2317 = vst [vmem:[#allocation57_spill] sm:$0xff] %v1402_v58  ;;  %v1405_v59 = vld [vmem:[%s1068_s14 + $0x360] sm:$0xff]  ;;  %v1408_v60 = vld [vmem:[%s1068_s14 + $0x368] sm:$0xff] }
  0x3f   : > { %2318 = vst [vmem:[#allocation58_spill] sm:$0xff] %v1405_v59  ;;  %2319 = vst [vmem:[#allocation59_spill] sm:$0xff] %v1408_v60  ;;  %v1411_v61 = vld [vmem:[%s1068_s14 + $0x370] sm:$0xff]  ;;  %v1414_v62 = vld [vmem:[%s1068_s14 + $0x378] sm:$0xff] }
  0x40   : > { %2320 = vst [vmem:[#allocation60_spill] sm:$0xff] %v1411_v61  ;;  %2321 = vst [vmem:[#allocation61_spill] sm:$0xff] %v1414_v62  ;;  %v1417_v63 = vld [vmem:[%s1068_s14 + $0x380] sm:$0xff]  ;;  %v1420_v57 = vld [vmem:[%s1068_s14 + $0x388] sm:$0xff] }
  0x41   : > { %2322 = vst [vmem:[#allocation62_spill] sm:$0xff] %v1417_v63  ;;  %2323 = vst [vmem:[#allocation63_spill] sm:$0xff] %v1420_v57  ;;  %v1423_v58 = vld [vmem:[%s1068_s14 + $0x390] sm:$0xff]  ;;  %v1426_v59 = vld [vmem:[%s1068_s14 + $0x398] sm:$0xff] }
  0x42   : > { %2324 = vst [vmem:[#allocation64_spill] sm:$0xff] %v1423_v58  ;;  %2325 = vst [vmem:[#allocation65_spill] sm:$0xff] %v1426_v59  ;;  %v1429_v60 = vld [vmem:[%s1068_s14 + $0x3a0] sm:$0xff]  ;;  %v1432_v61 = vld [vmem:[%s1068_s14 + $0x3a8] sm:$0xff] }
  0x43   : > { %2326 = vst [vmem:[#allocation66_spill] sm:$0xff] %v1429_v60  ;;  %2327 = vst [vmem:[#allocation67_spill] sm:$0xff] %v1432_v61  ;;  %v1435_v62 = vld [vmem:[%s1068_s14 + $0x3b0] sm:$0xff]  ;;  %v1438_v63 = vld [vmem:[%s1068_s14 + $0x3b8] sm:$0xff] }
  0x44   : > { %2328 = vst [vmem:[#allocation68_spill] sm:$0xff] %v1435_v62  ;;  %2329 = vst [vmem:[#allocation69_spill] sm:$0xff] %v1438_v63  ;;  %v1441_v57 = vld [vmem:[%s1068_s14 + $0x3c0] sm:$0xff]  ;;  %v1444_v58 = vld [vmem:[%s1068_s14 + $0x3c8] sm:$0xff] }
  0x45   : > { %2330 = vst [vmem:[#allocation70_spill] sm:$0xff] %v1441_v57  ;;  %2331 = vst [vmem:[#allocation71_spill] sm:$0xff] %v1444_v58  ;;  %v1447_v59 = vld [vmem:[%s1068_s14 + $0x3d0] sm:$0xff]  ;;  %v1450_v60 = vld [vmem:[%s1068_s14 + $0x3d8] sm:$0xff] }
  0x46   : > { %2332 = vst [vmem:[#allocation72_spill] sm:$0xff] %v1447_v59  ;;  %2333 = vst [vmem:[#allocation73_spill] sm:$0xff] %v1450_v60  ;;  %v1453_v61 = vld [vmem:[%s1068_s14 + $0x3e0] sm:$0xff]  ;;  %v1456_v62 = vld [vmem:[%s1068_s14 + $0x3e8] sm:$0xff] }
  0x47   : > { %2334 = vst [vmem:[#allocation74_spill] sm:$0xff] %v1453_v61  ;;  %2335 = vst [vmem:[#allocation75_spill] sm:$0xff] %v1456_v62  ;;  %v1459_v63 = vld [vmem:[%s1068_s14 + $0x3f0] sm:$0xff]  ;;  %v1462_v57 = vld [vmem:[%s1068_s14 + $0x3f8] sm:$0xff] }
  0x48   : > { %2336 = vst [vmem:[#allocation76_spill] sm:$0xff] %v1459_v63  ;;  %2337 = vst [vmem:[#allocation77_spill] sm:$0xff] %v1462_v57  ;;  %v1465_v58 = vld [vmem:[%s1068_s14 + $0x400] sm:$0xff]  ;;  %v1468_v59 = vld [vmem:[%s1068_s14 + $0x408] sm:$0xff] }
  0x49   : > { %2338 = vst [vmem:[#allocation78_spill] sm:$0xff] %v1465_v58  ;;  %2339 = vst [vmem:[#allocation79_spill] sm:$0xff] %v1468_v59  ;;  %v1471_v60 = vld [vmem:[%s1068_s14 + $0x410] sm:$0xff]  ;;  %v1474_v61 = vld [vmem:[%s1068_s14 + $0x418] sm:$0xff] }
  0x4a   : > { %2340 = vst [vmem:[#allocation80_spill] sm:$0xff] %v1471_v60  ;;  %2341 = vst [vmem:[#allocation81_spill] sm:$0xff] %v1474_v61  ;;  %v1477_v62 = vld [vmem:[%s1068_s14 + $0x420] sm:$0xff]  ;;  %v1480_v63 = vld [vmem:[%s1068_s14 + $0x428] sm:$0xff] }
  0x4b   : > { %2342 = vst [vmem:[#allocation82_spill] sm:$0xff] %v1477_v62  ;;  %2343 = vst [vmem:[#allocation83_spill] sm:$0xff] %v1480_v63  ;;  %v1483_v57 = vld [vmem:[%s1068_s14 + $0x430] sm:$0xff]  ;;  %v1486_v58 = vld [vmem:[%s1068_s14 + $0x438] sm:$0xff] }
  0x4c   : > { %2344 = vst [vmem:[#allocation84_spill] sm:$0xff] %v1483_v57  ;;  %2345 = vst [vmem:[#allocation85_spill] sm:$0xff] %v1486_v58  ;;  %v1489_v59 = vld [vmem:[%s1068_s14 + $0x440] sm:$0xff]  ;;  %v1492_v60 = vld [vmem:[%s1068_s14 + $0x448] sm:$0xff] }
  0x4d   : > { %2346 = vst [vmem:[#allocation86_spill] sm:$0xff] %v1489_v59  ;;  %2347 = vst [vmem:[#allocation87_spill] sm:$0xff] %v1492_v60  ;;  %v1495_v61 = vld [vmem:[%s1068_s14 + $0x450] sm:$0xff]  ;;  %v1498_v62 = vld [vmem:[%s1068_s14 + $0x458] sm:$0xff] }
  0x4e   : > { %2348 = vst [vmem:[#allocation88_spill] sm:$0xff] %v1495_v61  ;;  %2349 = vst [vmem:[#allocation89_spill] sm:$0xff] %v1498_v62  ;;  %v1501_v63 = vld [vmem:[%s1068_s14 + $0x460] sm:$0xff]  ;;  %v1504_v57 = vld [vmem:[%s1068_s14 + $0x468] sm:$0xff] }
  0x4f   : > { %2350 = vst [vmem:[#allocation90_spill] sm:$0xff] %v1501_v63  ;;  %2351 = vst [vmem:[#allocation91_spill] sm:$0xff] %v1504_v57  ;;  %v1507_v58 = vld [vmem:[%s1068_s14 + $0x470] sm:$0xff]  ;;  %v1510_v59 = vld [vmem:[%s1068_s14 + $0x478] sm:$0xff] }
  0x50   : > { %2352 = vst [vmem:[#allocation92_spill] sm:$0xff] %v1507_v58  ;;  %2353 = vst [vmem:[#allocation93_spill] sm:$0xff] %v1510_v59  ;;  %v1513_v60 = vld [vmem:[%s1068_s14 + $0x480] sm:$0xff]  ;;  %v1516_v61 = vld [vmem:[%s1068_s14 + $0x488] sm:$0xff] }
  0x51   : > { %2354 = vst [vmem:[#allocation94_spill] sm:$0xff] %v1513_v60  ;;  %2355 = vst [vmem:[#allocation95_spill] sm:$0xff] %v1516_v61  ;;  %v1519_v62 = vld [vmem:[%s1068_s14 + $0x490] sm:$0xff]  ;;  %v1522_v63 = vld [vmem:[%s1068_s14 + $0x498] sm:$0xff] }
  0x52   : > { %2356 = vst [vmem:[#allocation96_spill] sm:$0xff] %v1519_v62  ;;  %2357 = vst [vmem:[#allocation97_spill] sm:$0xff] %v1522_v63  ;;  %v1525_v57 = vld [vmem:[%s1068_s14 + $0x4a0] sm:$0xff]  ;;  %v1528_v58 = vld [vmem:[%s1068_s14 + $0x4a8] sm:$0xff] }
  0x53   : > { %2358 = vst [vmem:[#allocation98_spill] sm:$0xff] %v1525_v57  ;;  %2359 = vst [vmem:[#allocation99_spill] sm:$0xff] %v1528_v58  ;;  %v1531_v59 = vld [vmem:[%s1068_s14 + $0x4b0] sm:$0xff]  ;;  %v1534_v60 = vld [vmem:[%s1068_s14 + $0x4b8] sm:$0xff] }
  0x54   : > { %2360 = vst [vmem:[#allocation100_spill] sm:$0xff] %v1531_v59  ;;  %2361 = vst [vmem:[#allocation101_spill] sm:$0xff] %v1534_v60  ;;  %v1537_v61 = vld [vmem:[%s1068_s14 + $0x4c0] sm:$0xff]  ;;  %v1540_v62 = vld [vmem:[%s1068_s14 + $0x4c8] sm:$0xff] }
  0x55   : > { %2362 = vst [vmem:[#allocation102_spill] sm:$0xff] %v1537_v61  ;;  %2363 = vst [vmem:[#allocation103_spill] sm:$0xff] %v1540_v62  ;;  %v1543_v63 = vld [vmem:[%s1068_s14 + $0x4d0] sm:$0xff]  ;;  %v1546_v57 = vld [vmem:[%s1068_s14 + $0x4d8] sm:$0xff] }
  0x56   : > { %2364 = vst [vmem:[#allocation104_spill] sm:$0xff] %v1543_v63  ;;  %2365 = vst [vmem:[#allocation105_spill] sm:$0xff] %v1546_v57  ;;  %v1549_v58 = vld [vmem:[%s1068_s14 + $0x4e0] sm:$0xff]  ;;  %v1552_v59 = vld [vmem:[%s1068_s14 + $0x4e8] sm:$0xff] }
  0x57   : > { %2366 = vst [vmem:[#allocation106_spill] sm:$0xff] %v1549_v58  ;;  %2367 = vst [vmem:[#allocation107_spill] sm:$0xff] %v1552_v59  ;;  %v1555_v60 = vld [vmem:[%s1068_s14 + $0x4f0] sm:$0xff]  ;;  %v1558_v61 = vld [vmem:[%s1068_s14 + $0x4f8] sm:$0xff] }
  0x58   : > { %2368 = vst [vmem:[#allocation108_spill] sm:$0xff] %v1555_v60  ;;  %2369 = vst [vmem:[#allocation109_spill] sm:$0xff] %v1558_v61  ;;  %v1561_v62 = vld [vmem:[%s1068_s14 + $0x500] sm:$0xff]  ;;  %v1564_v63 = vld [vmem:[%s1068_s14 + $0x508] sm:$0xff] }
  0x59   : > { %2370 = vst [vmem:[#allocation110_spill] sm:$0xff] %v1561_v62  ;;  %2371 = vst [vmem:[#allocation111_spill] sm:$0xff] %v1564_v63  ;;  %v1567_v57 = vld [vmem:[%s1068_s14 + $0x510] sm:$0xff]  ;;  %v1570_v58 = vld [vmem:[%s1068_s14 + $0x518] sm:$0xff] }
  0x5a   : > { %2372 = vst [vmem:[#allocation112_spill] sm:$0xff] %v1567_v57  ;;  %2373 = vst [vmem:[#allocation113_spill] sm:$0xff] %v1570_v58  ;;  %v1573_v59 = vld [vmem:[%s1068_s14 + $0x520] sm:$0xff]  ;;  %v1576_v60 = vld [vmem:[%s1068_s14 + $0x528] sm:$0xff] }
  0x5b   : > { %2374 = vst [vmem:[#allocation114_spill] sm:$0xff] %v1573_v59  ;;  %2375 = vst [vmem:[#allocation115_spill] sm:$0xff] %v1576_v60  ;;  %v1579_v61 = vld [vmem:[%s1068_s14 + $0x530] sm:$0xff]  ;;  %v1582_v62 = vld [vmem:[%s1068_s14 + $0x538] sm:$0xff] }
  0x5c   : > { %2376 = vst [vmem:[#allocation116_spill] sm:$0xff] %v1579_v61  ;;  %2377 = vst [vmem:[#allocation117_spill] sm:$0xff] %v1582_v62  ;;  %v1585_v63 = vld [vmem:[%s1068_s14 + $0x540] sm:$0xff]  ;;  %v1588_v57 = vld [vmem:[%s1068_s14 + $0x548] sm:$0xff] }
  0x5d   : > { %2378 = vst [vmem:[#allocation118_spill] sm:$0xff] %v1585_v63  ;;  %2379 = vst [vmem:[#allocation119_spill] sm:$0xff] %v1588_v57  ;;  %v1591_v58 = vld [vmem:[%s1068_s14 + $0x550] sm:$0xff]  ;;  %v1594_v59 = vld [vmem:[%s1068_s14 + $0x558] sm:$0xff] }
  0x5e   : > { %2380 = vst [vmem:[#allocation120_spill] sm:$0xff] %v1591_v58  ;;  %2381 = vst [vmem:[#allocation121_spill] sm:$0xff] %v1594_v59  ;;  %v1597_v60 = vld [vmem:[%s1068_s14 + $0x560] sm:$0xff]  ;;  %v1600_v61 = vld [vmem:[%s1068_s14 + $0x568] sm:$0xff] }
  0x5f   : > { %2382 = vst [vmem:[#allocation122_spill] sm:$0xff] %v1597_v60  ;;  %2383 = vst [vmem:[#allocation123_spill] sm:$0xff] %v1600_v61  ;;  %v1603_v62 = vld [vmem:[%s1068_s14 + $0x570] sm:$0xff]  ;;  %v1606_v63 = vld [vmem:[%s1068_s14 + $0x578] sm:$0xff] }
  0x60   : > { %2384 = vst [vmem:[#allocation124_spill] sm:$0xff] %v1603_v62  ;;  %2385 = vst [vmem:[#allocation125_spill] sm:$0xff] %v1606_v63  ;;  %v1609_v57 = vld [vmem:[%s1068_s14 + $0x580] sm:$0xff]  ;;  %v1612_v58 = vld [vmem:[%s1068_s14 + $0x588] sm:$0xff] }
  0x61   : > { %2386 = vst [vmem:[#allocation126_spill] sm:$0xff] %v1609_v57  ;;  %2387 = vst [vmem:[#allocation127_spill] sm:$0xff] %v1612_v58  ;;  %v1615_v59 = vld [vmem:[%s1068_s14 + $0x590] sm:$0xff]  ;;  %v1618_v60 = vld [vmem:[%s1068_s14 + $0x598] sm:$0xff] }
  0x62   : > { %2388 = vst [vmem:[#allocation128_spill] sm:$0xff] %v1615_v59  ;;  %2389 = vst [vmem:[#allocation129_spill] sm:$0xff] %v1618_v60  ;;  %v1621_v61 = vld [vmem:[%s1068_s14 + $0x5a0] sm:$0xff]  ;;  %v1624_v62 = vld [vmem:[%s1068_s14 + $0x5a8] sm:$0xff] }
  0x63   : > { %2390 = vst [vmem:[#allocation130_spill] sm:$0xff] %v1621_v61  ;;  %2391 = vst [vmem:[#allocation131_spill] sm:$0xff] %v1624_v62  ;;  %v1627_v63 = vld [vmem:[%s1068_s14 + $0x5b0] sm:$0xff]  ;;  %v1630_v56 = vld [vmem:[%s1068_s14 + $0x5b8] sm:$0xff] }
  0x64   : > { %2392 = vst [vmem:[#allocation132_spill] sm:$0xff] %v1627_v63  ;;  %2393 = vst [vmem:[#allocation133_spill] sm:$0xff] %v1630_v56  ;;  %v1633_v57 = vld [vmem:[%s1068_s14 + $0x5c0] sm:$0xff]  ;;  %v1636_v58 = vld [vmem:[%s1068_s14 + $0x5c8] sm:$0xff] }
  0x65   : > { %2394 = vst [vmem:[#allocation134_spill] sm:$0xff] %v1633_v57  ;;  %2395 = vst [vmem:[#allocation135_spill] sm:$0xff] %v1636_v58  ;;  %v1639_v59 = vld [vmem:[%s1068_s14 + $0x5d0] sm:$0xff]  ;;  %v1642_v60 = vld [vmem:[%s1068_s14 + $0x5d8] sm:$0xff] }
  0x66   : > { %2396 = vst [vmem:[#allocation136_spill] sm:$0xff] %v1639_v59  ;;  %2397 = vst [vmem:[#allocation137_spill] sm:$0xff] %v1642_v60  ;;  %v1645_v61 = vld [vmem:[%s1068_s14 + $0x5e0] sm:$0xff]  ;;  %v1648_v55 = vld [vmem:[%s1068_s14 + $0x5e8] sm:$0xff] }
  0x67   : > { %2398 = vst [vmem:[#allocation138_spill] sm:$0xff] %v1645_v61  ;;  %2399 = vst [vmem:[#allocation139_spill] sm:$0xff] %v1648_v55  ;;  %v1651_v62 = vld [vmem:[%s1068_s14 + $0x5f0] sm:$0xff]  ;;  %v1654_v63 = vld [vmem:[%s1068_s14 + $0x5f8] sm:$0xff] }
  0x68   : > { %2400 = vst [vmem:[#allocation140_spill] sm:$0xff] %v1651_v62  ;;  %2401 = vst [vmem:[#allocation141_spill] sm:$0xff] %v1654_v63  ;;  %v1657_v57 = vld [vmem:[%s1068_s14 + $0x600] sm:$0xff]  ;;  %v1660_v58 = vld [vmem:[%s1068_s14 + $0x608] sm:$0xff] }
  0x69   : > { %2402 = vst [vmem:[#allocation142_spill] sm:$0xff] %v1657_v57  ;;  %2403 = vst [vmem:[#allocation143_spill] sm:$0xff] %v1660_v58  ;;  %v1663_v59 = vld [vmem:[%s1068_s14 + $0x610] sm:$0xff]  ;;  %v1666_v60 = vld [vmem:[%s1068_s14 + $0x618] sm:$0xff] }
  0x6a   : > { %2404 = vst [vmem:[#allocation144_spill] sm:$0xff] %v1663_v59  ;;  %2405 = vst [vmem:[#allocation145_spill] sm:$0xff] %v1666_v60  ;;  %v360_v61 = vld [vmem:[%s1079_s17] sm:$0xff]  ;;  %v361_v56 = vld [vmem:[%s1079_s17 + $0x8] sm:$0xff] }
  0x6b   : > { %v556_v55 = vadd.f32 %v360_v61, %v1071_v0  ;;  %v557_v62 = vadd.f32 %v361_v56, %v1074_v1  ;;  %v362_v63 = vld [vmem:[%s1079_s17 + $0x10] sm:$0xff]  ;;  %v363_v57 = vld [vmem:[%s1079_s17 + $0x18] sm:$0xff]  ;;  %v364_v54 = vld [vmem:[%s1079_s17 + $0x20] sm:$0xff] }
  0x6c   : > { %v558_v58 = vadd.f32 %v362_v63, %v1082_v2  ;;  %v559_v59 = vadd.f32 %v363_v57, %v1085_v3  ;;  %v560_v60 = vadd.f32 %v364_v54, %v1088_v4  ;;  %v365_v53 = vld [vmem:[%s1079_s17 + $0x28] sm:$0xff]  ;;  %v366_v52 = vld [vmem:[%s1079_s17 + $0x30] sm:$0xff]  ;;  %v367_v0 = vld [vmem:[%s1079_s17 + $0x38] sm:$0xff] }
  0x6d   : > { %752 = vst [vmem:[%s1111_s20] sm:$0xff] %v556_v55  ;;  %753 = vst [vmem:[%s1111_s20 + $0x8] sm:$0xff] %v557_v62  ;;  %v561_v1 = vadd.f32 %v365_v53, %v1091_v5  ;;  %v562_v56 = vadd.f32 %v366_v52, %v1094_v6  ;;  %v563_v2 = vadd.f32 %v367_v0, %v1097_v7  ;;  %v368_v3 = vld [vmem:[%s1079_s17 + $0x40] sm:$0xff]  ;;  %v369_v57 = vld [vmem:[%s1079_s17 + $0x48] sm:$0xff] }
  0x6e   : > { %v370_v4 = vld [vmem:[%s1079_s17 + $0x50] sm:$0xff]  ;;  %754 = vst [vmem:[%s1111_s20 + $0x10] sm:$0xff] %v558_v58  ;;  %755 = vst [vmem:[%s1111_s20 + $0x18] sm:$0xff] %v559_v59  ;;  %v564_v54 = vadd.f32 %v368_v3, %v1100_v8  ;;  %v565_v5 = vadd.f32 %v369_v57, %v1103_v9  ;;  %v371_v52 = vld [vmem:[%s1079_s17 + $0x58] sm:$0xff] }
  0x6f   : > { %756 = vst [vmem:[%s1111_s20 + $0x20] sm:$0xff] %v560_v60  ;;  %v566_v6 = vadd.f32 %v370_v4, %v1106_v10  ;;  %v372_v7 = vld [vmem:[%s1079_s17 + $0x60] sm:$0xff]  ;;  %v373_v53 = vld [vmem:[%s1079_s17 + $0x68] sm:$0xff]  ;;  %757 = vst [vmem:[%s1111_s20 + $0x28] sm:$0xff] %v561_v1  ;;  %v567_v55 = vadd.f32 %v371_v52, %v1114_v11 }
  0x70   : > { %758 = vst [vmem:[%s1111_s20 + $0x30] sm:$0xff] %v562_v56  ;;  %759 = vst [vmem:[%s1111_s20 + $0x38] sm:$0xff] %v563_v2  ;;  %v568_v8 = vadd.f32 %v372_v7, %v1117_v12  ;;  %v569_v9 = vadd.f32 %v373_v53, %v1120_v13  ;;  %v374_v58 = vld [vmem:[%s1079_s17 + $0x70] sm:$0xff]  ;;  %v375_v10 = vld [vmem:[%s1079_s17 + $0x78] sm:$0xff] }
  0x71   : > { %v376_v59 = vld [vmem:[%s1079_s17 + $0x80] sm:$0xff]  ;;  %760 = vst [vmem:[%s1111_s20 + $0x40] sm:$0xff] %v564_v54  ;;  %761 = vst [vmem:[%s1111_s20 + $0x48] sm:$0xff] %v565_v5  ;;  %v570_v60 = vadd.f32 %v374_v58, %v1123_v14  ;;  %v571_v11 = vadd.f32 %v375_v10, %v1126_v15  ;;  %v377_v61 = vld [vmem:[%s1079_s17 + $0x88] sm:$0xff] }
  0x72   : > { %762 = vst [vmem:[%s1111_s20 + $0x50] sm:$0xff] %v566_v6  ;;  %v572_v12 = vadd.f32 %v376_v59, %v1129_v16  ;;  %v378_v13 = vld [vmem:[%s1079_s17 + $0x90] sm:$0xff]  ;;  %v379_v62 = vld [vmem:[%s1079_s17 + $0x98] sm:$0xff]  ;;  %763 = vst [vmem:[%s1111_s20 + $0x58] sm:$0xff] %v567_v55  ;;  %v573_v63 = vadd.f32 %v377_v61, %v1132_v17 }
  0x73   : > { %764 = vst [vmem:[%s1111_s20 + $0x60] sm:$0xff] %v568_v8  ;;  %765 = vst [vmem:[%s1111_s20 + $0x68] sm:$0xff] %v569_v9  ;;  %v574_v14 = vadd.f32 %v378_v13, %v1135_v18  ;;  %v575_v15 = vadd.f32 %v379_v62, %v1138_v19  ;;  %v380_v0 = vld [vmem:[%s1079_s17 + $0xa0] sm:$0xff]  ;;  %v381_v16 = vld [vmem:[%s1079_s17 + $0xa8] sm:$0xff] }
  0x74   : > { %v382_v1 = vld [vmem:[%s1079_s17 + $0xb0] sm:$0xff]  ;;  %766 = vst [vmem:[%s1111_s20 + $0x70] sm:$0xff] %v570_v60  ;;  %767 = vst [vmem:[%s1111_s20 + $0x78] sm:$0xff] %v571_v11  ;;  %v576_v56 = vadd.f32 %v380_v0, %v1141_v20  ;;  %v577_v17 = vadd.f32 %v381_v16, %v1144_v21  ;;  %v383_v2 = vld [vmem:[%s1079_s17 + $0xb8] sm:$0xff] }
  0x75   : > { %768 = vst [vmem:[%s1111_s20 + $0x80] sm:$0xff] %v572_v12  ;;  %v578_v18 = vadd.f32 %v382_v1, %v1147_v22  ;;  %v384_v19 = vld [vmem:[%s1079_s17 + $0xc0] sm:$0xff]  ;;  %v385_v3 = vld [vmem:[%s1079_s17 + $0xc8] sm:$0xff]  ;;  %769 = vst [vmem:[%s1111_s20 + $0x88] sm:$0xff] %v573_v63  ;;  %v579_v57 = vadd.f32 %v383_v2, %v1150_v23 }
  0x76   : > { %770 = vst [vmem:[%s1111_s20 + $0x90] sm:$0xff] %v574_v14  ;;  %771 = vst [vmem:[%s1111_s20 + $0x98] sm:$0xff] %v575_v15  ;;  %v580_v20 = vadd.f32 %v384_v19, %v1153_v24  ;;  %v581_v21 = vadd.f32 %v385_v3, %v1156_v25  ;;  %v386_v4 = vld [vmem:[%s1079_s17 + $0xd0] sm:$0xff]  ;;  %v387_v22 = vld [vmem:[%s1079_s17 + $0xd8] sm:$0xff] }
  0x77   : > { %v388_v54 = vld [vmem:[%s1079_s17 + $0xe0] sm:$0xff]  ;;  %772 = vst [vmem:[%s1111_s20 + $0xa0] sm:$0xff] %v576_v56  ;;  %773 = vst [vmem:[%s1111_s20 + $0xa8] sm:$0xff] %v577_v17  ;;  %v582_v5 = vadd.f32 %v386_v4, %v1159_v26  ;;  %v583_v23 = vadd.f32 %v387_v22, %v1162_v27  ;;  %v389_v6 = vld [vmem:[%s1079_s17 + $0xe8] sm:$0xff] }
  0x78   : > { %774 = vst [vmem:[%s1111_s20 + $0xb0] sm:$0xff] %v578_v18  ;;  %v584_v24 = vadd.f32 %v388_v54, %v1165_v28  ;;  %v390_v25 = vld [vmem:[%s1079_s17 + $0xf0] sm:$0xff]  ;;  %v391_v52 = vld [vmem:[%s1079_s17 + $0xf8] sm:$0xff]  ;;  %775 = vst [vmem:[%s1111_s20 + $0xb8] sm:$0xff] %v579_v57  ;;  %v585_v7 = vadd.f32 %v389_v6, %v1168_v29 }
  0x79   : > { %776 = vst [vmem:[%s1111_s20 + $0xc0] sm:$0xff] %v580_v20  ;;  %777 = vst [vmem:[%s1111_s20 + $0xc8] sm:$0xff] %v581_v21  ;;  %v586_v26 = vadd.f32 %v390_v25, %v1171_v30  ;;  %v587_v27 = vadd.f32 %v391_v52, %v1174_v31  ;;  %v392_v53 = vld [vmem:[%s1079_s17 + $0x100] sm:$0xff]  ;;  %v393_v28 = vld [vmem:[%s1079_s17 + $0x108] sm:$0xff] }
  0x7a   : > { %v394_v55 = vld [vmem:[%s1079_s17 + $0x110] sm:$0xff]  ;;  %778 = vst [vmem:[%s1111_s20 + $0xd0] sm:$0xff] %v582_v5  ;;  %779 = vst [vmem:[%s1111_s20 + $0xd8] sm:$0xff] %v583_v23  ;;  %v588_v8 = vadd.f32 %v392_v53, %v1177_v32  ;;  %v589_v29 = vadd.f32 %v393_v28, %v1180_v33  ;;  %v395_v9 = vld [vmem:[%s1079_s17 + $0x118] sm:$0xff] }
  0x7b   : > { %780 = vst [vmem:[%s1111_s20 + $0xe0] sm:$0xff] %v584_v24  ;;  %v590_v30 = vadd.f32 %v394_v55, %v1183_v34  ;;  %v396_v31 = vld [vmem:[%s1079_s17 + $0x120] sm:$0xff]  ;;  %v397_v58 = vld [vmem:[%s1079_s17 + $0x128] sm:$0xff]  ;;  %781 = vst [vmem:[%s1111_s20 + $0xe8] sm:$0xff] %v585_v7  ;;  %v591_v10 = vadd.f32 %v395_v9, %v1186_v35 }
  0x7c   : > { %782 = vst [vmem:[%s1111_s20 + $0xf0] sm:$0xff] %v586_v26  ;;  %783 = vst [vmem:[%s1111_s20 + $0xf8] sm:$0xff] %v587_v27  ;;  %v592_v32 = vadd.f32 %v396_v31, %v1189_v36  ;;  %v593_v33 = vadd.f32 %v397_v58, %v1192_v37  ;;  %v398_v59 = vld [vmem:[%s1079_s17 + $0x130] sm:$0xff]  ;;  %v399_v34 = vld [vmem:[%s1079_s17 + $0x138] sm:$0xff] }
  0x7d   : > { %v400_v60 = vld [vmem:[%s1079_s17 + $0x140] sm:$0xff]  ;;  %784 = vst [vmem:[%s1111_s20 + $0x100] sm:$0xff] %v588_v8  ;;  %785 = vst [vmem:[%s1111_s20 + $0x108] sm:$0xff] %v589_v29  ;;  %v594_v11 = vadd.f32 %v398_v59, %v1195_v38  ;;  %v595_v35 = vadd.f32 %v399_v34, %v1198_v39  ;;  %v401_v12 = vld [vmem:[%s1079_s17 + $0x148] sm:$0xff] }
  0x7e   : > { %786 = vst [vmem:[%s1111_s20 + $0x110] sm:$0xff] %v590_v30  ;;  %v596_v36 = vadd.f32 %v400_v60, %v1201_v40  ;;  %v402_v37 = vld [vmem:[%s1079_s17 + $0x150] sm:$0xff]  ;;  %v403_v61 = vld [vmem:[%s1079_s17 + $0x158] sm:$0xff]  ;;  %787 = vst [vmem:[%s1111_s20 + $0x118] sm:$0xff] %v591_v10  ;;  %v597_v13 = vadd.f32 %v401_v12, %v1204_v41 }
  0x7f   : > { %788 = vst [vmem:[%s1111_s20 + $0x120] sm:$0xff] %v592_v32  ;;  %789 = vst [vmem:[%s1111_s20 + $0x128] sm:$0xff] %v593_v33  ;;  %v598_v38 = vadd.f32 %v402_v37, %v1207_v42  ;;  %v599_v39 = vadd.f32 %v403_v61, %v1210_v43  ;;  %v404_v62 = vld [vmem:[%s1079_s17 + $0x160] sm:$0xff]  ;;  %v405_v40 = vld [vmem:[%s1079_s17 + $0x168] sm:$0xff] }
  0x80   : > { %v406_v63 = vld [vmem:[%s1079_s17 + $0x170] sm:$0xff]  ;;  %790 = vst [vmem:[%s1111_s20 + $0x130] sm:$0xff] %v594_v11  ;;  %791 = vst [vmem:[%s1111_s20 + $0x138] sm:$0xff] %v595_v35  ;;  %v600_v14 = vadd.f32 %v404_v62, %v1213_v44  ;;  %v601_v41 = vadd.f32 %v405_v40, %v1216_v45  ;;  %v407_v15 = vld [vmem:[%s1079_s17 + $0x178] sm:$0xff] }
  0x81   : > { %792 = vst [vmem:[%s1111_s20 + $0x140] sm:$0xff] %v596_v36  ;;  %v602_v42 = vadd.f32 %v406_v63, %v1219_v46  ;;  %v408_v43 = vld [vmem:[%s1079_s17 + $0x180] sm:$0xff]  ;;  %v409_v0 = vld [vmem:[%s1079_s17 + $0x188] sm:$0xff]  ;;  %793 = vst [vmem:[%s1111_s20 + $0x148] sm:$0xff] %v597_v13  ;;  %v603_v16 = vadd.f32 %v407_v15, %v1222_v47 }
  0x82   : > { %794 = vst [vmem:[%s1111_s20 + $0x150] sm:$0xff] %v598_v38  ;;  %795 = vst [vmem:[%s1111_s20 + $0x158] sm:$0xff] %v599_v39  ;;  %v604_v44 = vadd.f32 %v408_v43, %v1225_v48  ;;  %v605_v45 = vadd.f32 %v409_v0, %v1228_v49  ;;  %v410_v1 = vld [vmem:[%s1079_s17 + $0x190] sm:$0xff]  ;;  %v411_v46 = vld [vmem:[%s1079_s17 + $0x198] sm:$0xff] }
  0x83   : > { %v412_v56 = vld [vmem:[%s1079_s17 + $0x1a0] sm:$0xff]  ;;  %796 = vst [vmem:[%s1111_s20 + $0x160] sm:$0xff] %v600_v14  ;;  %797 = vst [vmem:[%s1111_s20 + $0x168] sm:$0xff] %v601_v41  ;;  %v606_v17 = vadd.f32 %v410_v1, %v1231_v50  ;;  %v607_v47 = vadd.f32 %v411_v46, %v1234_v51  ;;  %v413_v2 = vld [vmem:[%s1079_s17 + $0x1a8] sm:$0xff] }
  0x84   : > { %798 = vst [vmem:[%s1111_s20 + $0x170] sm:$0xff] %v602_v42  ;;  %v2406_v18 = vld [vmem:[#allocation2_spill] sm:$0xff]  ;;  %v414_v49 = vld [vmem:[%s1079_s17 + $0x1b0] sm:$0xff]  ;;  %v415_v19 = vld [vmem:[%s1079_s17 + $0x1b8] sm:$0xff] }
  0x85   : > { %v608_v48 = vadd.f32 %v412_v56, %v2406_v18  ;;  %799 = vst [vmem:[%s1111_s20 + $0x178] sm:$0xff] %v603_v16  ;;  %800 = vst [vmem:[%s1111_s20 + $0x180] sm:$0xff] %v604_v44  ;;  %v2407_v3 = vld [vmem:[#allocation3_spill] sm:$0xff]  ;;  %v2408_v20 = vld [vmem:[#allocation4_spill] sm:$0xff] }
  0x86   : > { %801 = vst [vmem:[%s1111_s20 + $0x188] sm:$0xff] %v605_v45  ;;  %v609_v57 = vadd.f32 %v413_v2, %v2407_v3  ;;  %v610_v50 = vadd.f32 %v414_v49, %v2408_v20  ;;  %v2409_v21 = vld [vmem:[#allocation5_spill] sm:$0xff]  ;;  %v416_v4 = vld [vmem:[%s1079_s17 + $0x1c0] sm:$0xff]  ;;  %v417_v22 = vld [vmem:[%s1079_s17 + $0x1c8] sm:$0xff] }
  0x87   : > { %v611_v51 = vadd.f32 %v415_v19, %v2409_v21  ;;  %v418_v54 = vld [vmem:[%s1079_s17 + $0x1d0] sm:$0xff]  ;;  %802 = vst [vmem:[%s1111_s20 + $0x190] sm:$0xff] %v606_v17  ;;  %803 = vst [vmem:[%s1111_s20 + $0x198] sm:$0xff] %v607_v47  ;;  %v2410_v5 = vld [vmem:[#allocation6_spill] sm:$0xff] }
  0x88   : > { %804 = vst [vmem:[%s1111_s20 + $0x1a0] sm:$0xff] %v608_v48  ;;  %v612_v23 = vadd.f32 %v416_v4, %v2410_v5  ;;  %v2411_v24 = vld [vmem:[#allocation7_spill] sm:$0xff]  ;;  %v2412_v25 = vld [vmem:[#allocation8_spill] sm:$0xff]  ;;  %v419_v7 = vld [vmem:[%s1079_s17 + $0x1d8] sm:$0xff] }
  0x89   : > { %v613_v6 = vadd.f32 %v417_v22, %v2411_v24  ;;  %v614_v52 = vadd.f32 %v418_v54, %v2412_v25  ;;  %v420_v26 = vld [vmem:[%s1079_s17 + $0x1e0] sm:$0xff]  ;;  %v421_v27 = vld [vmem:[%s1079_s17 + $0x1e8] sm:$0xff]  ;;  %805 = vst [vmem:[%s1111_s20 + $0x1a8] sm:$0xff] %v609_v57  ;;  %806 = vst [vmem:[%s1111_s20 + $0x1b0] sm:$0xff] %v610_v50 }
  0x8a   : > { %807 = vst [vmem:[%s1111_s20 + $0x1b8] sm:$0xff] %v611_v51  ;;  %v2413_v53 = vld [vmem:[#allocation9_spill] sm:$0xff]  ;;  %v2414_v55 = vld [vmem:[#allocation10_spill] sm:$0xff]  ;;  %v2415_v29 = vld [vmem:[#allocation11_spill] sm:$0xff] }
  0x8b   : > { %v615_v28 = vadd.f32 %v419_v7, %v2413_v53  ;;  %v616_v8 = vadd.f32 %v420_v26, %v2414_v55  ;;  %v617_v30 = vadd.f32 %v421_v27, %v2415_v29  ;;  %v422_v9 = vld [vmem:[%s1079_s17 + $0x1f0] sm:$0xff]  ;;  %v423_v31 = vld [vmem:[%s1079_s17 + $0x1f8] sm:$0xff]  ;;  %v424_v58 = vld [vmem:[%s1079_s17 + $0x200] sm:$0xff]  ;;  %808 = vst [vmem:[%s1111_s20 + $0x1c0] sm:$0xff] %v612_v23 }
  0x8c   : > { %809 = vst [vmem:[%s1111_s20 + $0x1c8] sm:$0xff] %v613_v6  ;;  %810 = vst [vmem:[%s1111_s20 + $0x1d0] sm:$0xff] %v614_v52  ;;  %v2416_v10 = vld [vmem:[#allocation12_spill] sm:$0xff]  ;;  %v2417_v33 = vld [vmem:[#allocation13_spill] sm:$0xff] }
  0x8d   : > { %v618_v32 = vadd.f32 %v422_v9, %v2416_v10  ;;  %v619_v59 = vadd.f32 %v423_v31, %v2417_v33  ;;  %v2418_v34 = vld [vmem:[#allocation14_spill] sm:$0xff]  ;;  %v425_v11 = vld [vmem:[%s1079_s17 + $0x208] sm:$0xff]  ;;  %v426_v35 = vld [vmem:[%s1079_s17 + $0x210] sm:$0xff]  ;;  %811 = vst [vmem:[%s1111_s20 + $0x1d8] sm:$0xff] %v615_v28 }
  0x8e   : > { %v620_v60 = vadd.f32 %v424_v58, %v2418_v34  ;;  %v427_v36 = vld [vmem:[%s1079_s17 + $0x218] sm:$0xff]  ;;  %812 = vst [vmem:[%s1111_s20 + $0x1e0] sm:$0xff] %v616_v8  ;;  %813 = vst [vmem:[%s1111_s20 + $0x1e8] sm:$0xff] %v617_v30  ;;  %v2419_v12 = vld [vmem:[#allocation15_spill] sm:$0xff] }
  0x8f   : > { %v621_v37 = vadd.f32 %v425_v11, %v2419_v12  ;;  %v2420_v61 = vld [vmem:[#allocation16_spill] sm:$0xff]  ;;  %v2421_v38 = vld [vmem:[#allocation17_spill] sm:$0xff]  ;;  %v428_v62 = vld [vmem:[%s1079_s17 + $0x220] sm:$0xff]  ;;  %814 = vst [vmem:[%s1111_s20 + $0x1f0] sm:$0xff] %v618_v32 }
  0x90   : > { %v622_v13 = vadd.f32 %v426_v35, %v2420_v61  ;;  %v623_v39 = vadd.f32 %v427_v36, %v2421_v38  ;;  %v429_v40 = vld [vmem:[%s1079_s17 + $0x228] sm:$0xff]  ;;  %v430_v63 = vld [vmem:[%s1079_s17 + $0x230] sm:$0xff]  ;;  %815 = vst [vmem:[%s1111_s20 + $0x1f8] sm:$0xff] %v619_v59  ;;  %816 = vst [vmem:[%s1111_s20 + $0x200] sm:$0xff] %v620_v60 }
  0x91   : > { %v2422_v14 = vld [vmem:[#allocation18_spill] sm:$0xff]  ;;  %v2423_v42 = vld [vmem:[#allocation19_spill] sm:$0xff]  ;;  %v2424_v43 = vld [vmem:[#allocation20_spill] sm:$0xff]  ;;  %817 = vst [vmem:[%s1111_s20 + $0x208] sm:$0xff] %v621_v37 }
  0x92   : > { %v624_v41 = vadd.f32 %v428_v62, %v2422_v14  ;;  %v625_v15 = vadd.f32 %v429_v40, %v2423_v42  ;;  %v626_v0 = vadd.f32 %v430_v63, %v2424_v43  ;;  %v431_v16 = vld [vmem:[%s1079_s17 + $0x238] sm:$0xff]  ;;  %v432_v44 = vld [vmem:[%s1079_s17 + $0x240] sm:$0xff]  ;;  %v433_v45 = vld [vmem:[%s1079_s17 + $0x248] sm:$0xff]  ;;  %818 = vst [vmem:[%s1111_s20 + $0x210] sm:$0xff] %v622_v13 }
  0x93   : > { %819 = vst [vmem:[%s1111_s20 + $0x218] sm:$0xff] %v623_v39  ;;  %v2425_v1 = vld [vmem:[#allocation21_spill] sm:$0xff]  ;;  %v2426_v56 = vld [vmem:[#allocation22_spill] sm:$0xff]  ;;  %v2427_v47 = vld [vmem:[#allocation23_spill] sm:$0xff] }
  0x94   : > { %v627_v46 = vadd.f32 %v431_v16, %v2425_v1  ;;  %v628_v17 = vadd.f32 %v432_v44, %v2426_v56  ;;  %v629_v18 = vadd.f32 %v433_v45, %v2427_v47  ;;  %v434_v48 = vld [vmem:[%s1079_s17 + $0x250] sm:$0xff]  ;;  %v435_v2 = vld [vmem:[%s1079_s17 + $0x258] sm:$0xff]  ;;  %v436_v49 = vld [vmem:[%s1079_s17 + $0x260] sm:$0xff]  ;;  %820 = vst [vmem:[%s1111_s20 + $0x220] sm:$0xff] %v624_v41 }
  0x95   : > { %821 = vst [vmem:[%s1111_s20 + $0x228] sm:$0xff] %v625_v15  ;;  %822 = vst [vmem:[%s1111_s20 + $0x230] sm:$0xff] %v626_v0  ;;  %v2428_v19 = vld [vmem:[#allocation24_spill] sm:$0xff]  ;;  %v2429_v57 = vld [vmem:[#allocation25_spill] sm:$0xff] }
  0x96   : > { %v630_v3 = vadd.f32 %v434_v48, %v2428_v19  ;;  %v631_v20 = vadd.f32 %v435_v2, %v2429_v57  ;;  %v2430_v50 = vld [vmem:[#allocation26_spill] sm:$0xff]  ;;  %v437_v51 = vld [vmem:[%s1079_s17 + $0x268] sm:$0xff]  ;;  %v438_v4 = vld [vmem:[%s1079_s17 + $0x270] sm:$0xff]  ;;  %823 = vst [vmem:[%s1111_s20 + $0x238] sm:$0xff] %v627_v46 }
  0x97   : > { %v632_v21 = vadd.f32 %v436_v49, %v2430_v50  ;;  %v439_v22 = vld [vmem:[%s1079_s17 + $0x278] sm:$0xff]  ;;  %824 = vst [vmem:[%s1111_s20 + $0x240] sm:$0xff] %v628_v17  ;;  %825 = vst [vmem:[%s1111_s20 + $0x248] sm:$0xff] %v629_v18  ;;  %v2431_v54 = vld [vmem:[#allocation27_spill] sm:$0xff] }
  0x98   : > { %v633_v5 = vadd.f32 %v437_v51, %v2431_v54  ;;  %v2432_v23 = vld [vmem:[#allocation28_spill] sm:$0xff]  ;;  %v2433_v6 = vld [vmem:[#allocation29_spill] sm:$0xff]  ;;  %v440_v52 = vld [vmem:[%s1079_s17 + $0x280] sm:$0xff]  ;;  %826 = vst [vmem:[%s1111_s20 + $0x250] sm:$0xff] %v630_v3 }
  0x99   : > { %v634_v24 = vadd.f32 %v438_v4, %v2432_v23  ;;  %v635_v25 = vadd.f32 %v439_v22, %v2433_v6  ;;  %v441_v7 = vld [vmem:[%s1079_s17 + $0x288] sm:$0xff]  ;;  %v442_v26 = vld [vmem:[%s1079_s17 + $0x290] sm:$0xff]  ;;  %827 = vst [vmem:[%s1111_s20 + $0x258] sm:$0xff] %v631_v20  ;;  %828 = vst [vmem:[%s1111_s20 + $0x260] sm:$0xff] %v632_v21 }
  0x9a   : > { %v2434_v27 = vld [vmem:[#allocation30_spill] sm:$0xff]  ;;  %v2435_v28 = vld [vmem:[#allocation31_spill] sm:$0xff]  ;;  %v2436_v8 = vld [vmem:[#allocation32_spill] sm:$0xff]  ;;  %829 = vst [vmem:[%s1111_s20 + $0x268] sm:$0xff] %v633_v5 }
  0x9b   : > { %v636_v53 = vadd.f32 %v440_v52, %v2434_v27  ;;  %v637_v55 = vadd.f32 %v441_v7, %v2435_v28  ;;  %v638_v29 = vadd.f32 %v442_v26, %v2436_v8  ;;  %v443_v30 = vld [vmem:[%s1079_s17 + $0x298] sm:$0xff]  ;;  %v444_v9 = vld [vmem:[%s1079_s17 + $0x2a0] sm:$0xff]  ;;  %v445_v31 = vld [vmem:[%s1079_s17 + $0x2a8] sm:$0xff]  ;;  %830 = vst [vmem:[%s1111_s20 + $0x270] sm:$0xff] %v634_v24 }
  0x9c   : > { %831 = vst [vmem:[%s1111_s20 + $0x278] sm:$0xff] %v635_v25  ;;  %v2437_v58 = vld [vmem:[#allocation33_spill] sm:$0xff]  ;;  %v2438_v32 = vld [vmem:[#allocation34_spill] sm:$0xff]  ;;  %v2439_v59 = vld [vmem:[#allocation35_spill] sm:$0xff] }
  0x9d   : > { %v639_v10 = vadd.f32 %v443_v30, %v2437_v58  ;;  %v640_v33 = vadd.f32 %v444_v9, %v2438_v32  ;;  %v641_v34 = vadd.f32 %v445_v31, %v2439_v59  ;;  %v446_v60 = vld [vmem:[%s1079_s17 + $0x2b0] sm:$0xff]  ;;  %v447_v11 = vld [vmem:[%s1079_s17 + $0x2b8] sm:$0xff]  ;;  %v448_v35 = vld [vmem:[%s1079_s17 + $0x2c0] sm:$0xff]  ;;  %832 = vst [vmem:[%s1111_s20 + $0x280] sm:$0xff] %v636_v53 }
  0x9e   : > { %833 = vst [vmem:[%s1111_s20 + $0x288] sm:$0xff] %v637_v55  ;;  %834 = vst [vmem:[%s1111_s20 + $0x290] sm:$0xff] %v638_v29  ;;  %v2440_v36 = vld [vmem:[#allocation36_spill] sm:$0xff]  ;;  %v2441_v37 = vld [vmem:[#allocation37_spill] sm:$0xff] }
  0x9f   : > { %v642_v12 = vadd.f32 %v446_v60, %v2440_v36  ;;  %v643_v61 = vadd.f32 %v447_v11, %v2441_v37  ;;  %v2442_v13 = vld [vmem:[#allocation38_spill] sm:$0xff]  ;;  %v449_v39 = vld [vmem:[%s1079_s17 + $0x2c8] sm:$0xff]  ;;  %v450_v62 = vld [vmem:[%s1079_s17 + $0x2d0] sm:$0xff]  ;;  %835 = vst [vmem:[%s1111_s20 + $0x298] sm:$0xff] %v639_v10 }
  0xa0   : > { %v644_v38 = vadd.f32 %v448_v35, %v2442_v13  ;;  %v451_v40 = vld [vmem:[%s1079_s17 + $0x2d8] sm:$0xff]  ;;  %836 = vst [vmem:[%s1111_s20 + $0x2a0] sm:$0xff] %v640_v33  ;;  %837 = vst [vmem:[%s1111_s20 + $0x2a8] sm:$0xff] %v641_v34  ;;  %v2443_v63 = vld [vmem:[#allocation39_spill] sm:$0xff] }
  0xa1   : > { %v645_v14 = vadd.f32 %v449_v39, %v2443_v63  ;;  %v2444_v41 = vld [vmem:[#allocation40_spill] sm:$0xff]  ;;  %v2445_v15 = vld [vmem:[#allocation41_spill] sm:$0xff]  ;;  %v452_v0 = vld [vmem:[%s1079_s17 + $0x2e0] sm:$0xff]  ;;  %838 = vst [vmem:[%s1111_s20 + $0x2b0] sm:$0xff] %v642_v12 }
  0xa2   : > { %v646_v42 = vadd.f32 %v450_v62, %v2444_v41  ;;  %v647_v43 = vadd.f32 %v451_v40, %v2445_v15  ;;  %v453_v16 = vld [vmem:[%s1079_s17 + $0x2e8] sm:$0xff]  ;;  %v454_v44 = vld [vmem:[%s1079_s17 + $0x2f0] sm:$0xff]  ;;  %839 = vst [vmem:[%s1111_s20 + $0x2b8] sm:$0xff] %v643_v61  ;;  %840 = vst [vmem:[%s1111_s20 + $0x2c0] sm:$0xff] %v644_v38 }
  0xa3   : > { %v2446_v45 = vld [vmem:[#allocation42_spill] sm:$0xff]  ;;  %v2447_v46 = vld [vmem:[#allocation43_spill] sm:$0xff]  ;;  %v2448_v17 = vld [vmem:[#allocation44_spill] sm:$0xff]  ;;  %841 = vst [vmem:[%s1111_s20 + $0x2c8] sm:$0xff] %v645_v14 }
  0xa4   : > { %v648_v1 = vadd.f32 %v452_v0, %v2446_v45  ;;  %v649_v56 = vadd.f32 %v453_v16, %v2447_v46  ;;  %v650_v47 = vadd.f32 %v454_v44, %v2448_v17  ;;  %v455_v18 = vld [vmem:[%s1079_s17 + $0x2f8] sm:$0xff]  ;;  %v456_v48 = vld [vmem:[%s1079_s17 + $0x300] sm:$0xff]  ;;  %v457_v2 = vld [vmem:[%s1079_s17 + $0x308] sm:$0xff]  ;;  %842 = vst [vmem:[%s1111_s20 + $0x2d0] sm:$0xff] %v646_v42 }
  0xa5   : > { %843 = vst [vmem:[%s1111_s20 + $0x2d8] sm:$0xff] %v647_v43  ;;  %v2449_v49 = vld [vmem:[#allocation45_spill] sm:$0xff]  ;;  %v2450_v3 = vld [vmem:[#allocation46_spill] sm:$0xff]  ;;  %v2451_v20 = vld [vmem:[#allocation47_spill] sm:$0xff] }
  0xa6   : > { %v651_v19 = vadd.f32 %v455_v18, %v2449_v49  ;;  %v652_v57 = vadd.f32 %v456_v48, %v2450_v3  ;;  %v653_v50 = vadd.f32 %v457_v2, %v2451_v20  ;;  %v458_v21 = vld [vmem:[%s1079_s17 + $0x310] sm:$0xff]  ;;  %v459_v51 = vld [vmem:[%s1079_s17 + $0x318] sm:$0xff]  ;;  %v460_v4 = vld [vmem:[%s1079_s17 + $0x320] sm:$0xff]  ;;  %844 = vst [vmem:[%s1111_s20 + $0x2e0] sm:$0xff] %v648_v1 }
  0xa7   : > { %845 = vst [vmem:[%s1111_s20 + $0x2e8] sm:$0xff] %v649_v56  ;;  %846 = vst [vmem:[%s1111_s20 + $0x2f0] sm:$0xff] %v650_v47  ;;  %v2452_v22 = vld [vmem:[#allocation48_spill] sm:$0xff]  ;;  %v2453_v5 = vld [vmem:[#allocation49_spill] sm:$0xff] }
  0xa8   : > { %v654_v54 = vadd.f32 %v458_v21, %v2452_v22  ;;  %v655_v23 = vadd.f32 %v459_v51, %v2453_v5  ;;  %v2454_v24 = vld [vmem:[#allocation50_spill] sm:$0xff]  ;;  %v461_v25 = vld [vmem:[%s1079_s17 + $0x328] sm:$0xff]  ;;  %v462_v52 = vld [vmem:[%s1079_s17 + $0x330] sm:$0xff]  ;;  %847 = vst [vmem:[%s1111_s20 + $0x2f8] sm:$0xff] %v651_v19 }
  0xa9   : > { %v656_v6 = vadd.f32 %v460_v4, %v2454_v24  ;;  %v463_v7 = vld [vmem:[%s1079_s17 + $0x338] sm:$0xff]  ;;  %848 = vst [vmem:[%s1111_s20 + $0x300] sm:$0xff] %v652_v57  ;;  %849 = vst [vmem:[%s1111_s20 + $0x308] sm:$0xff] %v653_v50  ;;  %v2455_v26 = vld [vmem:[#allocation51_spill] sm:$0xff] }
  0xaa   : > { %v657_v27 = vadd.f32 %v461_v25, %v2455_v26  ;;  %v2456_v53 = vld [vmem:[#allocation52_spill] sm:$0xff]  ;;  %v2457_v55 = vld [vmem:[#allocation53_spill] sm:$0xff]  ;;  %v464_v29 = vld [vmem:[%s1079_s17 + $0x340] sm:$0xff]  ;;  %850 = vst [vmem:[%s1111_s20 + $0x310] sm:$0xff] %v654_v54 }
  0xab   : > { %v658_v28 = vadd.f32 %v462_v52, %v2456_v53  ;;  %v659_v8 = vadd.f32 %v463_v7, %v2457_v55  ;;  %v465_v30 = vld [vmem:[%s1079_s17 + $0x348] sm:$0xff]  ;;  %v466_v9 = vld [vmem:[%s1079_s17 + $0x350] sm:$0xff]  ;;  %851 = vst [vmem:[%s1111_s20 + $0x318] sm:$0xff] %v655_v23  ;;  %852 = vst [vmem:[%s1111_s20 + $0x320] sm:$0xff] %v656_v6 }
  0xac   : > { %v2458_v31 = vld [vmem:[#allocation54_spill] sm:$0xff]  ;;  %v2459_v10 = vld [vmem:[#allocation55_spill] sm:$0xff]  ;;  %v2460_v33 = vld [vmem:[#allocation56_spill] sm:$0xff]  ;;  %853 = vst [vmem:[%s1111_s20 + $0x328] sm:$0xff] %v657_v27 }
  0xad   : > { %v660_v58 = vadd.f32 %v464_v29, %v2458_v31  ;;  %v661_v32 = vadd.f32 %v465_v30, %v2459_v10  ;;  %v662_v59 = vadd.f32 %v466_v9, %v2460_v33  ;;  %v467_v34 = vld [vmem:[%s1079_s17 + $0x358] sm:$0xff]  ;;  %v468_v60 = vld [vmem:[%s1079_s17 + $0x360] sm:$0xff]  ;;  %v469_v11 = vld [vmem:[%s1079_s17 + $0x368] sm:$0xff]  ;;  %854 = vst [vmem:[%s1111_s20 + $0x330] sm:$0xff] %v658_v28 }
  0xae   : > { %855 = vst [vmem:[%s1111_s20 + $0x338] sm:$0xff] %v659_v8  ;;  %v2461_v35 = vld [vmem:[#allocation57_spill] sm:$0xff]  ;;  %v2462_v12 = vld [vmem:[#allocation58_spill] sm:$0xff]  ;;  %v2463_v61 = vld [vmem:[#allocation59_spill] sm:$0xff] }
  0xaf   : > { %v663_v36 = vadd.f32 %v467_v34, %v2461_v35  ;;  %v664_v37 = vadd.f32 %v468_v60, %v2462_v12  ;;  %v665_v13 = vadd.f32 %v469_v11, %v2463_v61  ;;  %v470_v38 = vld [vmem:[%s1079_s17 + $0x370] sm:$0xff]  ;;  %v471_v39 = vld [vmem:[%s1079_s17 + $0x378] sm:$0xff]  ;;  %v472_v62 = vld [vmem:[%s1079_s17 + $0x380] sm:$0xff]  ;;  %856 = vst [vmem:[%s1111_s20 + $0x340] sm:$0xff] %v660_v58 }
  0xb0   : > { %857 = vst [vmem:[%s1111_s20 + $0x348] sm:$0xff] %v661_v32  ;;  %858 = vst [vmem:[%s1111_s20 + $0x350] sm:$0xff] %v662_v59  ;;  %v2464_v40 = vld [vmem:[#allocation60_spill] sm:$0xff]  ;;  %v2465_v14 = vld [vmem:[#allocation61_spill] sm:$0xff] }
  0xb1   : > { %v666_v63 = vadd.f32 %v470_v38, %v2464_v40  ;;  %v667_v41 = vadd.f32 %v471_v39, %v2465_v14  ;;  %v2466_v42 = vld [vmem:[#allocation62_spill] sm:$0xff]  ;;  %v473_v43 = vld [vmem:[%s1079_s17 + $0x388] sm:$0xff]  ;;  %v474_v0 = vld [vmem:[%s1079_s17 + $0x390] sm:$0xff]  ;;  %859 = vst [vmem:[%s1111_s20 + $0x358] sm:$0xff] %v663_v36 }
  0xb2   : > { %v668_v15 = vadd.f32 %v472_v62, %v2466_v42  ;;  %v475_v16 = vld [vmem:[%s1079_s17 + $0x398] sm:$0xff]  ;;  %860 = vst [vmem:[%s1111_s20 + $0x360] sm:$0xff] %v664_v37  ;;  %861 = vst [vmem:[%s1111_s20 + $0x368] sm:$0xff] %v665_v13  ;;  %v2467_v44 = vld [vmem:[#allocation63_spill] sm:$0xff] }
  0xb3   : > { %v669_v45 = vadd.f32 %v473_v43, %v2467_v44  ;;  %v2468_v1 = vld [vmem:[#allocation64_spill] sm:$0xff]  ;;  %v2469_v56 = vld [vmem:[#allocation65_spill] sm:$0xff]  ;;  %v476_v47 = vld [vmem:[%s1079_s17 + $0x3a0] sm:$0xff]  ;;  %862 = vst [vmem:[%s1111_s20 + $0x370] sm:$0xff] %v666_v63 }
  0xb4   : > { %v670_v46 = vadd.f32 %v474_v0, %v2468_v1  ;;  %v671_v17 = vadd.f32 %v475_v16, %v2469_v56  ;;  %v477_v18 = vld [vmem:[%s1079_s17 + $0x3a8] sm:$0xff]  ;;  %v478_v48 = vld [vmem:[%s1079_s17 + $0x3b0] sm:$0xff]  ;;  %863 = vst [vmem:[%s1111_s20 + $0x378] sm:$0xff] %v667_v41  ;;  %864 = vst [vmem:[%s1111_s20 + $0x380] sm:$0xff] %v668_v15 }
  0xb5   : > { %v2470_v2 = vld [vmem:[#allocation66_spill] sm:$0xff]  ;;  %v2471_v19 = vld [vmem:[#allocation67_spill] sm:$0xff]  ;;  %v2472_v57 = vld [vmem:[#allocation68_spill] sm:$0xff]  ;;  %865 = vst [vmem:[%s1111_s20 + $0x388] sm:$0xff] %v669_v45 }
  0xb6   : > { %v672_v49 = vadd.f32 %v476_v47, %v2470_v2  ;;  %v673_v3 = vadd.f32 %v477_v18, %v2471_v19  ;;  %v674_v20 = vadd.f32 %v478_v48, %v2472_v57  ;;  %v479_v50 = vld [vmem:[%s1079_s17 + $0x3b8] sm:$0xff]  ;;  %v480_v21 = vld [vmem:[%s1079_s17 + $0x3c0] sm:$0xff]  ;;  %v481_v51 = vld [vmem:[%s1079_s17 + $0x3c8] sm:$0xff]  ;;  %866 = vst [vmem:[%s1111_s20 + $0x390] sm:$0xff] %v670_v46 }
  0xb7   : > { %867 = vst [vmem:[%s1111_s20 + $0x398] sm:$0xff] %v671_v17  ;;  %v2473_v4 = vld [vmem:[#allocation69_spill] sm:$0xff]  ;;  %v2474_v54 = vld [vmem:[#allocation70_spill] sm:$0xff]  ;;  %v2475_v23 = vld [vmem:[#allocation71_spill] sm:$0xff] }
  0xb8   : > { %v675_v22 = vadd.f32 %v479_v50, %v2473_v4  ;;  %v676_v5 = vadd.f32 %v480_v21, %v2474_v54  ;;  %v677_v24 = vadd.f32 %v481_v51, %v2475_v23  ;;  %v482_v6 = vld [vmem:[%s1079_s17 + $0x3d0] sm:$0xff]  ;;  %v483_v25 = vld [vmem:[%s1079_s17 + $0x3d8] sm:$0xff]  ;;  %v484_v52 = vld [vmem:[%s1079_s17 + $0x3e0] sm:$0xff]  ;;  %868 = vst [vmem:[%s1111_s20 + $0x3a0] sm:$0xff] %v672_v49 }
  0xb9   : > { %869 = vst [vmem:[%s1111_s20 + $0x3a8] sm:$0xff] %v673_v3  ;;  %870 = vst [vmem:[%s1111_s20 + $0x3b0] sm:$0xff] %v674_v20  ;;  %v2476_v7 = vld [vmem:[#allocation72_spill] sm:$0xff]  ;;  %v2477_v27 = vld [vmem:[#allocation73_spill] sm:$0xff] }
  0xba   : > { %v678_v26 = vadd.f32 %v482_v6, %v2476_v7  ;;  %v679_v53 = vadd.f32 %v483_v25, %v2477_v27  ;;  %v2478_v28 = vld [vmem:[#allocation74_spill] sm:$0xff]  ;;  %v485_v8 = vld [vmem:[%s1079_s17 + $0x3e8] sm:$0xff]  ;;  %v486_v29 = vld [vmem:[%s1079_s17 + $0x3f0] sm:$0xff]  ;;  %871 = vst [vmem:[%s1111_s20 + $0x3b8] sm:$0xff] %v675_v22 }
  0xbb   : > { %v680_v55 = vadd.f32 %v484_v52, %v2478_v28  ;;  %v487_v30 = vld [vmem:[%s1079_s17 + $0x3f8] sm:$0xff]  ;;  %872 = vst [vmem:[%s1111_s20 + $0x3c0] sm:$0xff] %v676_v5  ;;  %873 = vst [vmem:[%s1111_s20 + $0x3c8] sm:$0xff] %v677_v24  ;;  %v2479_v9 = vld [vmem:[#allocation75_spill] sm:$0xff] }
  0xbc   : > { %v681_v31 = vadd.f32 %v485_v8, %v2479_v9  ;;  %v2480_v58 = vld [vmem:[#allocation76_spill] sm:$0xff]  ;;  %v2481_v32 = vld [vmem:[#allocation77_spill] sm:$0xff]  ;;  %v488_v59 = vld [vmem:[%s1079_s17 + $0x400] sm:$0xff]  ;;  %874 = vst [vmem:[%s1111_s20 + $0x3d0] sm:$0xff] %v678_v26 }
  0xbd   : > { %v682_v10 = vadd.f32 %v486_v29, %v2480_v58  ;;  %v683_v33 = vadd.f32 %v487_v30, %v2481_v32  ;;  %v489_v34 = vld [vmem:[%s1079_s17 + $0x408] sm:$0xff]  ;;  %v490_v60 = vld [vmem:[%s1079_s17 + $0x410] sm:$0xff]  ;;  %875 = vst [vmem:[%s1111_s20 + $0x3d8] sm:$0xff] %v679_v53  ;;  %876 = vst [vmem:[%s1111_s20 + $0x3e0] sm:$0xff] %v680_v55 }
  0xbe   : > { %v2482_v11 = vld [vmem:[#allocation78_spill] sm:$0xff]  ;;  %v2483_v36 = vld [vmem:[#allocation79_spill] sm:$0xff]  ;;  %v2484_v37 = vld [vmem:[#allocation80_spill] sm:$0xff]  ;;  %877 = vst [vmem:[%s1111_s20 + $0x3e8] sm:$0xff] %v681_v31 }
  0xbf   : > { %v684_v35 = vadd.f32 %v488_v59, %v2482_v11  ;;  %v685_v12 = vadd.f32 %v489_v34, %v2483_v36  ;;  %v686_v61 = vadd.f32 %v490_v60, %v2484_v37  ;;  %v491_v13 = vld [vmem:[%s1079_s17 + $0x418] sm:$0xff]  ;;  %v492_v38 = vld [vmem:[%s1079_s17 + $0x420] sm:$0xff]  ;;  %v493_v39 = vld [vmem:[%s1079_s17 + $0x428] sm:$0xff]  ;;  %878 = vst [vmem:[%s1111_s20 + $0x3f0] sm:$0xff] %v682_v10 }
  0xc0   : > { %879 = vst [vmem:[%s1111_s20 + $0x3f8] sm:$0xff] %v683_v33  ;;  %v2485_v62 = vld [vmem:[#allocation81_spill] sm:$0xff]  ;;  %v2486_v63 = vld [vmem:[#allocation82_spill] sm:$0xff]  ;;  %v2487_v41 = vld [vmem:[#allocation83_spill] sm:$0xff] }
  0xc1   : > { %v687_v40 = vadd.f32 %v491_v13, %v2485_v62  ;;  %v688_v14 = vadd.f32 %v492_v38, %v2486_v63  ;;  %v689_v42 = vadd.f32 %v493_v39, %v2487_v41  ;;  %v494_v15 = vld [vmem:[%s1079_s17 + $0x430] sm:$0xff]  ;;  %v495_v43 = vld [vmem:[%s1079_s17 + $0x438] sm:$0xff]  ;;  %v496_v0 = vld [vmem:[%s1079_s17 + $0x440] sm:$0xff]  ;;  %880 = vst [vmem:[%s1111_s20 + $0x400] sm:$0xff] %v684_v35 }
  0xc2   : > { %881 = vst [vmem:[%s1111_s20 + $0x408] sm:$0xff] %v685_v12  ;;  %882 = vst [vmem:[%s1111_s20 + $0x410] sm:$0xff] %v686_v61  ;;  %v2488_v16 = vld [vmem:[#allocation84_spill] sm:$0xff]  ;;  %v2489_v45 = vld [vmem:[#allocation85_spill] sm:$0xff] }
  0xc3   : > { %v690_v44 = vadd.f32 %v494_v15, %v2488_v16  ;;  %v691_v1 = vadd.f32 %v495_v43, %v2489_v45  ;;  %v2490_v46 = vld [vmem:[#allocation86_spill] sm:$0xff]  ;;  %v497_v17 = vld [vmem:[%s1079_s17 + $0x448] sm:$0xff]  ;;  %v498_v47 = vld [vmem:[%s1079_s17 + $0x450] sm:$0xff]  ;;  %883 = vst [vmem:[%s1111_s20 + $0x418] sm:$0xff] %v687_v40 }
  0xc4   : > { %v692_v56 = vadd.f32 %v496_v0, %v2490_v46  ;;  %v499_v18 = vld [vmem:[%s1079_s17 + $0x458] sm:$0xff]  ;;  %884 = vst [vmem:[%s1111_s20 + $0x420] sm:$0xff] %v688_v14  ;;  %885 = vst [vmem:[%s1111_s20 + $0x428] sm:$0xff] %v689_v42  ;;  %v2491_v48 = vld [vmem:[#allocation87_spill] sm:$0xff] }
  0xc5   : > { %v693_v2 = vadd.f32 %v497_v17, %v2491_v48  ;;  %v2492_v49 = vld [vmem:[#allocation88_spill] sm:$0xff]  ;;  %v2493_v3 = vld [vmem:[#allocation89_spill] sm:$0xff]  ;;  %v500_v20 = vld [vmem:[%s1079_s17 + $0x460] sm:$0xff]  ;;  %886 = vst [vmem:[%s1111_s20 + $0x430] sm:$0xff] %v690_v44 }
  0xc6   : > { %v694_v19 = vadd.f32 %v498_v47, %v2492_v49  ;;  %v695_v57 = vadd.f32 %v499_v18, %v2493_v3  ;;  %v501_v50 = vld [vmem:[%s1079_s17 + $0x468] sm:$0xff]  ;;  %v502_v21 = vld [vmem:[%s1079_s17 + $0x470] sm:$0xff]  ;;  %887 = vst [vmem:[%s1111_s20 + $0x438] sm:$0xff] %v691_v1  ;;  %888 = vst [vmem:[%s1111_s20 + $0x440] sm:$0xff] %v692_v56 }
  0xc7   : > { %v2494_v51 = vld [vmem:[#allocation90_spill] sm:$0xff]  ;;  %v2495_v22 = vld [vmem:[#allocation91_spill] sm:$0xff]  ;;  %v2496_v5 = vld [vmem:[#allocation92_spill] sm:$0xff]  ;;  %889 = vst [vmem:[%s1111_s20 + $0x448] sm:$0xff] %v693_v2 }
  0xc8   : > { %v696_v4 = vadd.f32 %v500_v20, %v2494_v51  ;;  %v697_v54 = vadd.f32 %v501_v50, %v2495_v22  ;;  %v698_v23 = vadd.f32 %v502_v21, %v2496_v5  ;;  %v503_v24 = vld [vmem:[%s1079_s17 + $0x478] sm:$0xff]  ;;  %v504_v6 = vld [vmem:[%s1079_s17 + $0x480] sm:$0xff]  ;;  %v505_v25 = vld [vmem:[%s1079_s17 + $0x488] sm:$0xff]  ;;  %890 = vst [vmem:[%s1111_s20 + $0x450] sm:$0xff] %v694_v19 }
  0xc9   : > { %891 = vst [vmem:[%s1111_s20 + $0x458] sm:$0xff] %v695_v57  ;;  %v2497_v52 = vld [vmem:[#allocation93_spill] sm:$0xff]  ;;  %v2498_v26 = vld [vmem:[#allocation94_spill] sm:$0xff]  ;;  %v2499_v53 = vld [vmem:[#allocation95_spill] sm:$0xff] }
  0xca   : > { %v699_v7 = vadd.f32 %v503_v24, %v2497_v52  ;;  %v700_v27 = vadd.f32 %v504_v6, %v2498_v26  ;;  %v701_v28 = vadd.f32 %v505_v25, %v2499_v53  ;;  %v506_v55 = vld [vmem:[%s1079_s17 + $0x490] sm:$0xff]  ;;  %v507_v8 = vld [vmem:[%s1079_s17 + $0x498] sm:$0xff]  ;;  %v508_v29 = vld [vmem:[%s1079_s17 + $0x4a0] sm:$0xff]  ;;  %892 = vst [vmem:[%s1111_s20 + $0x460] sm:$0xff] %v696_v4 }
  0xcb   : > { %893 = vst [vmem:[%s1111_s20 + $0x468] sm:$0xff] %v697_v54  ;;  %894 = vst [vmem:[%s1111_s20 + $0x470] sm:$0xff] %v698_v23  ;;  %v2500_v30 = vld [vmem:[#allocation96_spill] sm:$0xff]  ;;  %v2501_v31 = vld [vmem:[#allocation97_spill] sm:$0xff] }
  0xcc   : > { %v702_v9 = vadd.f32 %v506_v55, %v2500_v30  ;;  %v703_v58 = vadd.f32 %v507_v8, %v2501_v31  ;;  %v2502_v10 = vld [vmem:[#allocation98_spill] sm:$0xff]  ;;  %v509_v33 = vld [vmem:[%s1079_s17 + $0x4a8] sm:$0xff]  ;;  %v510_v59 = vld [vmem:[%s1079_s17 + $0x4b0] sm:$0xff]  ;;  %895 = vst [vmem:[%s1111_s20 + $0x478] sm:$0xff] %v699_v7 }
  0xcd   : > { %v704_v32 = vadd.f32 %v508_v29, %v2502_v10  ;;  %v511_v34 = vld [vmem:[%s1079_s17 + $0x4b8] sm:$0xff]  ;;  %896 = vst [vmem:[%s1111_s20 + $0x480] sm:$0xff] %v700_v27  ;;  %897 = vst [vmem:[%s1111_s20 + $0x488] sm:$0xff] %v701_v28  ;;  %v2503_v60 = vld [vmem:[#allocation99_spill] sm:$0xff] }
  0xce   : > { %v705_v11 = vadd.f32 %v509_v33, %v2503_v60  ;;  %v2504_v35 = vld [vmem:[#allocation100_spill] sm:$0xff]  ;;  %v2505_v12 = vld [vmem:[#allocation101_spill] sm:$0xff]  ;;  %v512_v61 = vld [vmem:[%s1079_s17 + $0x4c0] sm:$0xff]  ;;  %898 = vst [vmem:[%s1111_s20 + $0x490] sm:$0xff] %v702_v9 }
  0xcf   : > { %v706_v36 = vadd.f32 %v510_v59, %v2504_v35  ;;  %v707_v37 = vadd.f32 %v511_v34, %v2505_v12  ;;  %v513_v13 = vld [vmem:[%s1079_s17 + $0x4c8] sm:$0xff]  ;;  %v514_v38 = vld [vmem:[%s1079_s17 + $0x4d0] sm:$0xff]  ;;  %899 = vst [vmem:[%s1111_s20 + $0x498] sm:$0xff] %v703_v58  ;;  %900 = vst [vmem:[%s1111_s20 + $0x4a0] sm:$0xff] %v704_v32 }
  0xd0   : > { %v2506_v39 = vld [vmem:[#allocation102_spill] sm:$0xff]  ;;  %v2507_v40 = vld [vmem:[#allocation103_spill] sm:$0xff]  ;;  %v2508_v14 = vld [vmem:[#allocation104_spill] sm:$0xff]  ;;  %901 = vst [vmem:[%s1111_s20 + $0x4a8] sm:$0xff] %v705_v11 }
  0xd1   : > { %v708_v62 = vadd.f32 %v512_v61, %v2506_v39  ;;  %v709_v63 = vadd.f32 %v513_v13, %v2507_v40  ;;  %v710_v41 = vadd.f32 %v514_v38, %v2508_v14  ;;  %v515_v42 = vld [vmem:[%s1079_s17 + $0x4d8] sm:$0xff]  ;;  %v516_v15 = vld [vmem:[%s1079_s17 + $0x4e0] sm:$0xff]  ;;  %v517_v43 = vld [vmem:[%s1079_s17 + $0x4e8] sm:$0xff]  ;;  %902 = vst [vmem:[%s1111_s20 + $0x4b0] sm:$0xff] %v706_v36 }
  0xd2   : > { %903 = vst [vmem:[%s1111_s20 + $0x4b8] sm:$0xff] %v707_v37  ;;  %v2509_v0 = vld [vmem:[#allocation105_spill] sm:$0xff]  ;;  %v2510_v44 = vld [vmem:[#allocation106_spill] sm:$0xff]  ;;  %v2511_v1 = vld [vmem:[#allocation107_spill] sm:$0xff] }
  0xd3   : > { %v711_v16 = vadd.f32 %v515_v42, %v2509_v0  ;;  %v712_v45 = vadd.f32 %v516_v15, %v2510_v44  ;;  %v713_v46 = vadd.f32 %v517_v43, %v2511_v1  ;;  %v518_v56 = vld [vmem:[%s1079_s17 + $0x4f0] sm:$0xff]  ;;  %v519_v17 = vld [vmem:[%s1079_s17 + $0x4f8] sm:$0xff]  ;;  %v520_v47 = vld [vmem:[%s1079_s17 + $0x500] sm:$0xff]  ;;  %904 = vst [vmem:[%s1111_s20 + $0x4c0] sm:$0xff] %v708_v62 }
  0xd4   : > { %905 = vst [vmem:[%s1111_s20 + $0x4c8] sm:$0xff] %v709_v63  ;;  %906 = vst [vmem:[%s1111_s20 + $0x4d0] sm:$0xff] %v710_v41  ;;  %v2512_v18 = vld [vmem:[#allocation108_spill] sm:$0xff]  ;;  %v2513_v2 = vld [vmem:[#allocation109_spill] sm:$0xff] }
  0xd5   : > { %v714_v48 = vadd.f32 %v518_v56, %v2512_v18  ;;  %v715_v49 = vadd.f32 %v519_v17, %v2513_v2  ;;  %v2514_v19 = vld [vmem:[#allocation110_spill] sm:$0xff]  ;;  %v521_v57 = vld [vmem:[%s1079_s17 + $0x508] sm:$0xff]  ;;  %v522_v20 = vld [vmem:[%s1079_s17 + $0x510] sm:$0xff]  ;;  %907 = vst [vmem:[%s1111_s20 + $0x4d8] sm:$0xff] %v711_v16 }
  0xd6   : > { %v716_v3 = vadd.f32 %v520_v47, %v2514_v19  ;;  %v523_v50 = vld [vmem:[%s1079_s17 + $0x518] sm:$0xff]  ;;  %908 = vst [vmem:[%s1111_s20 + $0x4e0] sm:$0xff] %v712_v45  ;;  %909 = vst [vmem:[%s1111_s20 + $0x4e8] sm:$0xff] %v713_v46  ;;  %v2515_v21 = vld [vmem:[#allocation111_spill] sm:$0xff] }
  0xd7   : > { %v717_v51 = vadd.f32 %v521_v57, %v2515_v21  ;;  %v2516_v4 = vld [vmem:[#allocation112_spill] sm:$0xff]  ;;  %v2517_v54 = vld [vmem:[#allocation113_spill] sm:$0xff]  ;;  %v524_v23 = vld [vmem:[%s1079_s17 + $0x520] sm:$0xff]  ;;  %910 = vst [vmem:[%s1111_s20 + $0x4f0] sm:$0xff] %v714_v48 }
  0xd8   : > { %v718_v22 = vadd.f32 %v522_v20, %v2516_v4  ;;  %v719_v5 = vadd.f32 %v523_v50, %v2517_v54  ;;  %v525_v24 = vld [vmem:[%s1079_s17 + $0x528] sm:$0xff]  ;;  %v526_v6 = vld [vmem:[%s1079_s17 + $0x530] sm:$0xff]  ;;  %911 = vst [vmem:[%s1111_s20 + $0x4f8] sm:$0xff] %v715_v49  ;;  %912 = vst [vmem:[%s1111_s20 + $0x500] sm:$0xff] %v716_v3 }
  0xd9   : > { %v2518_v25 = vld [vmem:[#allocation114_spill] sm:$0xff]  ;;  %v2519_v7 = vld [vmem:[#allocation115_spill] sm:$0xff]  ;;  %v2520_v27 = vld [vmem:[#allocation116_spill] sm:$0xff]  ;;  %913 = vst [vmem:[%s1111_s20 + $0x508] sm:$0xff] %v717_v51 }
  0xda   : > { %v720_v52 = vadd.f32 %v524_v23, %v2518_v25  ;;  %v721_v26 = vadd.f32 %v525_v24, %v2519_v7  ;;  %v722_v53 = vadd.f32 %v526_v6, %v2520_v27  ;;  %v527_v28 = vld [vmem:[%s1079_s17 + $0x538] sm:$0xff]  ;;  %v528_v55 = vld [vmem:[%s1079_s17 + $0x540] sm:$0xff]  ;;  %v529_v8 = vld [vmem:[%s1079_s17 + $0x548] sm:$0xff]  ;;  %914 = vst [vmem:[%s1111_s20 + $0x510] sm:$0xff] %v718_v22 }
  0xdb   : > { %915 = vst [vmem:[%s1111_s20 + $0x518] sm:$0xff] %v719_v5  ;;  %v2521_v29 = vld [vmem:[#allocation117_spill] sm:$0xff]  ;;  %v2522_v9 = vld [vmem:[#allocation118_spill] sm:$0xff]  ;;  %v2523_v58 = vld [vmem:[#allocation119_spill] sm:$0xff] }
  0xdc   : > { %v723_v30 = vadd.f32 %v527_v28, %v2521_v29  ;;  %v724_v31 = vadd.f32 %v528_v55, %v2522_v9  ;;  %v725_v10 = vadd.f32 %v529_v8, %v2523_v58  ;;  %v530_v32 = vld [vmem:[%s1079_s17 + $0x550] sm:$0xff]  ;;  %v531_v33 = vld [vmem:[%s1079_s17 + $0x558] sm:$0xff]  ;;  %v532_v59 = vld [vmem:[%s1079_s17 + $0x560] sm:$0xff]  ;;  %916 = vst [vmem:[%s1111_s20 + $0x520] sm:$0xff] %v720_v52 }
  0xdd   : > { %917 = vst [vmem:[%s1111_s20 + $0x528] sm:$0xff] %v721_v26  ;;  %918 = vst [vmem:[%s1111_s20 + $0x530] sm:$0xff] %v722_v53  ;;  %v2524_v34 = vld [vmem:[#allocation120_spill] sm:$0xff]  ;;  %v2525_v11 = vld [vmem:[#allocation121_spill] sm:$0xff] }
  0xde   : > { %v726_v60 = vadd.f32 %v530_v32, %v2524_v34  ;;  %v727_v35 = vadd.f32 %v531_v33, %v2525_v11  ;;  %v2526_v36 = vld [vmem:[#allocation122_spill] sm:$0xff]  ;;  %v533_v37 = vld [vmem:[%s1079_s17 + $0x568] sm:$0xff]  ;;  %v534_v61 = vld [vmem:[%s1079_s17 + $0x570] sm:$0xff]  ;;  %919 = vst [vmem:[%s1111_s20 + $0x538] sm:$0xff] %v723_v30 }
  0xdf   : > { %v728_v12 = vadd.f32 %v532_v59, %v2526_v36  ;;  %v535_v13 = vld [vmem:[%s1079_s17 + $0x578] sm:$0xff]  ;;  %920 = vst [vmem:[%s1111_s20 + $0x540] sm:$0xff] %v724_v31  ;;  %921 = vst [vmem:[%s1111_s20 + $0x548] sm:$0xff] %v725_v10  ;;  %v2527_v38 = vld [vmem:[#allocation123_spill] sm:$0xff] }
  0xe0   : > { %v729_v39 = vadd.f32 %v533_v37, %v2527_v38  ;;  %v2528_v62 = vld [vmem:[#allocation124_spill] sm:$0xff]  ;;  %v2529_v63 = vld [vmem:[#allocation125_spill] sm:$0xff]  ;;  %v536_v41 = vld [vmem:[%s1079_s17 + $0x580] sm:$0xff]  ;;  %922 = vst [vmem:[%s1111_s20 + $0x550] sm:$0xff] %v726_v60 }
  0xe1   : > { %v730_v40 = vadd.f32 %v534_v61, %v2528_v62  ;;  %v731_v14 = vadd.f32 %v535_v13, %v2529_v63  ;;  %v537_v42 = vld [vmem:[%s1079_s17 + $0x588] sm:$0xff]  ;;  %v538_v15 = vld [vmem:[%s1079_s17 + $0x590] sm:$0xff]  ;;  %923 = vst [vmem:[%s1111_s20 + $0x558] sm:$0xff] %v727_v35  ;;  %924 = vst [vmem:[%s1111_s20 + $0x560] sm:$0xff] %v728_v12 }
  0xe2   : > { %v2530_v43 = vld [vmem:[#allocation126_spill] sm:$0xff]  ;;  %v2531_v16 = vld [vmem:[#allocation127_spill] sm:$0xff]  ;;  %v2532_v45 = vld [vmem:[#allocation128_spill] sm:$0xff]  ;;  %925 = vst [vmem:[%s1111_s20 + $0x568] sm:$0xff] %v729_v39 }
  0xe3   : > { %v732_v0 = vadd.f32 %v536_v41, %v2530_v43  ;;  %v733_v44 = vadd.f32 %v537_v42, %v2531_v16  ;;  %v734_v1 = vadd.f32 %v538_v15, %v2532_v45  ;;  %v539_v46 = vld [vmem:[%s1079_s17 + $0x598] sm:$0xff]  ;;  %v540_v56 = vld [vmem:[%s1079_s17 + $0x5a0] sm:$0xff]  ;;  %v541_v17 = vld [vmem:[%s1079_s17 + $0x5a8] sm:$0xff]  ;;  %926 = vst [vmem:[%s1111_s20 + $0x570] sm:$0xff] %v730_v40 }
  0xe4   : > { %927 = vst [vmem:[%s1111_s20 + $0x578] sm:$0xff] %v731_v14  ;;  %v2533_v47 = vld [vmem:[#allocation129_spill] sm:$0xff]  ;;  %v2534_v48 = vld [vmem:[#allocation130_spill] sm:$0xff]  ;;  %v2535_v49 = vld [vmem:[#allocation131_spill] sm:$0xff] }
  0xe5   : > { %v735_v18 = vadd.f32 %v539_v46, %v2533_v47  ;;  %v736_v2 = vadd.f32 %v540_v56, %v2534_v48  ;;  %v737_v19 = vadd.f32 %v541_v17, %v2535_v49  ;;  %v542_v3 = vld [vmem:[%s1079_s17 + $0x5b0] sm:$0xff]  ;;  %v543_v57 = vld [vmem:[%s1079_s17 + $0x5b8] sm:$0xff]  ;;  %v544_v20 = vld [vmem:[%s1079_s17 + $0x5c0] sm:$0xff]  ;;  %928 = vst [vmem:[%s1111_s20 + $0x580] sm:$0xff] %v732_v0 }
  0xe6   : > { %929 = vst [vmem:[%s1111_s20 + $0x588] sm:$0xff] %v733_v44  ;;  %930 = vst [vmem:[%s1111_s20 + $0x590] sm:$0xff] %v734_v1  ;;  %v2536_v50 = vld [vmem:[#allocation132_spill] sm:$0xff]  ;;  %v2537_v51 = vld [vmem:[#allocation133_spill] sm:$0xff] }
  0xe7   : > { %v738_v21 = vadd.f32 %v542_v3, %v2536_v50  ;;  %v739_v4 = vadd.f32 %v543_v57, %v2537_v51  ;;  %v2538_v22 = vld [vmem:[#allocation134_spill] sm:$0xff]  ;;  %v545_v5 = vld [vmem:[%s1079_s17 + $0x5c8] sm:$0xff]  ;;  %v546_v23 = vld [vmem:[%s1079_s17 + $0x5d0] sm:$0xff]  ;;  %931 = vst [vmem:[%s1111_s20 + $0x598] sm:$0xff] %v735_v18 }
  0xe8   : > { %v740_v54 = vadd.f32 %v544_v20, %v2538_v22  ;;  %v547_v24 = vld [vmem:[%s1079_s17 + $0x5d8] sm:$0xff]  ;;  %932 = vst [vmem:[%s1111_s20 + $0x5a0] sm:$0xff] %v736_v2  ;;  %933 = vst [vmem:[%s1111_s20 + $0x5a8] sm:$0xff] %v737_v19  ;;  %v2539_v6 = vld [vmem:[#allocation135_spill] sm:$0xff] }
  0xe9   : > { %v741_v25 = vadd.f32 %v545_v5, %v2539_v6  ;;  %v2540_v52 = vld [vmem:[#allocation136_spill] sm:$0xff]  ;;  %v2541_v26 = vld [vmem:[#allocation137_spill] sm:$0xff]  ;;  %v548_v53 = vld [vmem:[%s1079_s17 + $0x5e0] sm:$0xff]  ;;  %934 = vst [vmem:[%s1111_s20 + $0x5b0] sm:$0xff] %v738_v21 }
  0xea   : > { %v742_v7 = vadd.f32 %v546_v23, %v2540_v52  ;;  %v743_v27 = vadd.f32 %v547_v24, %v2541_v26  ;;  %v549_v28 = vld [vmem:[%s1079_s17 + $0x5e8] sm:$0xff]  ;;  %v550_v55 = vld [vmem:[%s1079_s17 + $0x5f0] sm:$0xff]  ;;  %935 = vst [vmem:[%s1111_s20 + $0x5b8] sm:$0xff] %v739_v4  ;;  %936 = vst [vmem:[%s1111_s20 + $0x5c0] sm:$0xff] %v740_v54 }
  0xeb   : > { %v2542_v8 = vld [vmem:[#allocation138_spill] sm:$0xff]  ;;  %v2543_v30 = vld [vmem:[#allocation139_spill] sm:$0xff]  ;;  %v2544_v31 = vld [vmem:[#allocation140_spill] sm:$0xff]  ;;  %937 = vst [vmem:[%s1111_s20 + $0x5c8] sm:$0xff] %v741_v25 }
  0xec   : > { %v744_v29 = vadd.f32 %v548_v53, %v2542_v8  ;;  %v745_v9 = vadd.f32 %v549_v28, %v2543_v30  ;;  %v746_v58 = vadd.f32 %v550_v55, %v2544_v31  ;;  %v551_v10 = vld [vmem:[%s1079_s17 + $0x5f8] sm:$0xff]  ;;  %v552_v32 = vld [vmem:[%s1079_s17 + $0x600] sm:$0xff]  ;;  %v553_v33 = vld [vmem:[%s1079_s17 + $0x608] sm:$0xff]  ;;  %938 = vst [vmem:[%s1111_s20 + $0x5d0] sm:$0xff] %v742_v7 }
  0xed   : > { %939 = vst [vmem:[%s1111_s20 + $0x5d8] sm:$0xff] %v743_v27  ;;  %v2545_v59 = vld [vmem:[#allocation141_spill] sm:$0xff]  ;;  %v2546_v60 = vld [vmem:[#allocation142_spill] sm:$0xff]  ;;  %v2547_v35 = vld [vmem:[#allocation143_spill] sm:$0xff] }
  0xee   : > { %v747_v34 = vadd.f32 %v551_v10, %v2545_v59  ;;  %v748_v11 = vadd.f32 %v552_v32, %v2546_v60  ;;  %v749_v36 = vadd.f32 %v553_v33, %v2547_v35  ;;  %v554_v12 = vld [vmem:[%s1079_s17 + $0x610] sm:$0xff]  ;;  %v555_v37 = vld [vmem:[%s1079_s17 + $0x618] sm:$0xff]  ;;  %940 = vst [vmem:[%s1111_s20 + $0x5e0] sm:$0xff] %v744_v29  ;;  %941 = vst [vmem:[%s1111_s20 + $0x5e8] sm:$0xff] %v745_v9 }
  0xef   : > { %942 = vst [vmem:[%s1111_s20 + $0x5f0] sm:$0xff] %v746_v58  ;;  %v2548_v61 = vld [vmem:[#allocation144_spill] sm:$0xff]  ;;  %v2549_v38 = vld [vmem:[#allocation145_spill] sm:$0xff] }
  0xf0   : > { %v750_v13 = vadd.f32 %v554_v12, %v2548_v61  ;;  %v751_v39 = vadd.f32 %v555_v37, %v2549_v38  ;;  %943 = vst [vmem:[%s1111_s20 + $0x5f8] sm:$0xff] %v747_v34  ;;  %944 = vst [vmem:[%s1111_s20 + $0x600] sm:$0xff] %v748_v11 }
  0xf1   : > { %945 = vst [vmem:[%s1111_s20 + $0x608] sm:$0xff] %v749_v36 }
  0xf2   : > { %946 = vst [vmem:[%s1111_s20 + $0x610] sm:$0xff] %v750_v13  ;;  %947 = vst [vmem:[%s1111_s20 + $0x618] sm:$0xff] %v751_v39 }
  0xf3 PF: > { %s12_s9 = sadd.s32 1, %s1040_s9  }
  0xf4   : > { %p9_p4 = scmp.ge.s32.totalorder %s12_s9, 4  }
  0xf6   :  { %11 = sbr.rel (!%p9_p4) target bundleno = 1 (0x1), region = 61 }

</bundles_post_ra>
